<compile_context>
chip_gen: v7x
topology: tpu7x:2x2x1
jax: 0.10.0
libtpu: 0.0.40
codegen_flags: <defaults>
</compile_context>

<pallas_src>
import jax
import jax.numpy as jnp
from jax.experimental import pallas as pl
from jax.experimental.pallas import tpu as pltpu


def _bcast_mul_kernel(scale_ref, x_ref, o_ref):
    # scale_ref: (Cb, 1) per-channel scale, x_ref: (Cb, HW), o_ref: (Cb, HW)
    o_ref[...] = scale_ref[...] * x_ref[...]


def _num_channel_blocks(rows):
    """2-way split only on v7x (2 TCs/chip); 1 block elsewhere."""
    n_blocks = 1
    try:
        kind = jax.devices()[0].device_kind.lower()
        if "v7" in kind:
            n_blocks = 2
    except Exception:
        n_blocks = 1
    # (8,128) rule: second-to-last block dim must be a multiple of 8 (or full).
    if rows % n_blocks != 0 or (rows // n_blocks) % 8 != 0:
        n_blocks = 1
    return n_blocks


def broadcast_mul(x314, x309):
    """x314 * x309 with per-channel broadcasting (NCHW).

    x314: (N, C, 1, 1), x309: (N, C, H, W)  ->  (N, C, H, W)
    """
    n, c, h, w = x309.shape
    assert x314.shape == (n, c, 1, 1)
    hw = h * w
    rows = n * c

    x_2d = x309.reshape(rows, hw)
    s_2d = x314.reshape(rows, 1)

    n_blocks = _num_channel_blocks(rows)
    cb = rows // n_blocks

    out = pl.pallas_call(
        _bcast_mul_kernel,
        out_shape=jax.ShapeDtypeStruct((rows, hw), x309.dtype),
        grid=(n_blocks,),
        in_specs=[
            pl.BlockSpec((cb, 1), lambda i: (i, 0)),
            pl.BlockSpec((cb, hw), lambda i: (i, 0)),
        ],
        out_specs=pl.BlockSpec((cb, hw), lambda i: (i, 0)),
        compiler_params=pltpu.CompilerParams(
            dimension_semantics=("parallel",)
        ),
    )(s_2d, x_2d)

    return out.reshape(n, c, h, w)


if __name__ == "__main__":
    key = jax.random.PRNGKey(0)
    k1, k2 = jax.random.split(key)
    # Shapes from the module: x309 [1, 960, 14, 14], x314 [1, 960, 1, 1]
    x309 = jax.random.normal(k1, (1, 960, 14, 14), dtype=jnp.float32)
    x314 = jax.random.normal(k2, (1, 960, 1, 1), dtype=jnp.float32)

    out = broadcast_mul(x314, x309)
    jax.block_until_ready(out)

    ref = x314 * x309
    assert out.shape == ref.shape
    assert jnp.allclose(out, ref, atol=1e-6, rtol=1e-6)
    print("KERNEL_OK")
</pallas_src>

<mosaic_0001>
module attributes {stable_mosaic.version = 11 : i64} {
  func.func @_bcast_mul_kernel(%arg0: i32, %arg1: memref<960x1xf32, #tpu.memory_space<vmem>>, %arg2: memref<960x196xf32, #tpu.memory_space<vmem>>, %arg3: memref<960x196xf32, #tpu.memory_space<vmem>>) attributes {dimension_semantics = [#tpu.dimension_semantics<parallel>], iteration_bounds = array<i64: 1>, scalar_prefetch = 0 : i64, scratch_operands = 0 : i64, tpu.core_type = #tpu.core_type<tc>, window_params = [{transform_indices = @transform_0, window_bounds = array<i64: 960, 1>}, {transform_indices = @transform_1, window_bounds = array<i64: 960, 196>}, {transform_indices = @transform_2, window_bounds = array<i64: 960, 196>}]} {
    %c0 = arith.constant 0 : index
    %c0_0 = arith.constant 0 : index
    %0 = vector.load %arg1[%c0, %c0_0] : memref<960x1xf32, #tpu.memory_space<vmem>>, vector<960x1xf32>
    %c0_1 = arith.constant 0 : index
    %c0_2 = arith.constant 0 : index
    %1 = vector.load %arg2[%c0_1, %c0_2] : memref<960x196xf32, #tpu.memory_space<vmem>>, vector<960x196xf32>
    %2 = vector.broadcast %0 : vector<960x1xf32> to vector<960x196xf32>
    %3 = arith.mulf %2, %1 : vector<960x196xf32>
    %c0_3 = arith.constant 0 : index
    %c0_4 = arith.constant 0 : index
    %4 = vector.load %arg3[%c0_3, %c0_4] : memref<960x196xf32, #tpu.memory_space<vmem>>, vector<960x196xf32>
    tpu.vector_store %arg3[%c0_3, %c0_4], %3 {strides = array<i32>} : memref<960x196xf32, #tpu.memory_space<vmem>>, vector<960x196xf32>,
    return
  }
  func.func @transform_0(%arg0: i32) -> (i32, i32) {
    %c0_i32 = arith.constant 0 : i32
    %c0_i32_0 = arith.constant 0 : i32
    return %arg0, %c0_i32 : i32, i32
  }
  func.func @transform_1(%arg0: i32) -> (i32, i32) {
    %c0_i32 = arith.constant 0 : i32
    %c0_i32_0 = arith.constant 0 : i32
    return %arg0, %c0_i32 : i32, i32
  }
  func.func @transform_2(%arg0: i32) -> (i32, i32) {
    %c0_i32 = arith.constant 0 : i32
    %c0_i32_0 = arith.constant 0 : i32
    return %arg0, %c0_i32 : i32, i32
  }
}

</mosaic_0001>

<bundles_post_ra>
// kernel: tpu_custom_call.1
= control target key start
LH: loop header
LB: loop body
LE: loop exit
PB: predicated region body
PF: predicated region fallthrough
CT: control target
= control target key end

     0   :  { %v1459_v0 = vmov 0   ;;  %vm1212_vm0 = vcmask 556032   ;;  %s3395_s0 = inlined_call_operand.vmem [shape: f32[960,1], index: 0, kind: input, shape index: {}]   ;;  %s3396_s1 = inlined_call_operand.vmem [shape: f32[960,196], index: 1, kind: input, shape index: {}]   ;;  %s3397_s2 = inlined_call_operand.vmem [shape: f32[960,196], index: 2, kind: output, shape index: {}]  }
   0x1   :  { %1458 = vset.pattern.permute.xlu1 %v1459_v0  ;;  %1457 = vset.pattern.permute.xlu0 %v1459_v0  ;;  %v13_v1 = vld [vmem:[%s3395_s0 + $0x10] sm:$0xff]  ;;  %v11_v2 = vld [vmem:[%s3395_s0] sm:$0xff]  ;;  %v14_v3 = vld [vmem:[%s3395_s0 + $0x18] sm:$0xff] }
   0x2   :  { %383 = vperm.xlu1 %1458, %v13_v1   ;;  %373 = vperm.xlu0 %1457, %v11_v2   ;;  %v12_v4 = vld [vmem:[%s3395_s0 + $0x8] sm:$0xff]  ;;  %v15_v6 = vld [vmem:[%s3395_s0 + $0x20] sm:$0xff]  ;;  %v18_v7 = vld [vmem:[%s3395_s0 + $0x38] sm:$0xff] }
   0x3   :  { %v16_v5 = vld [vmem:[%s3395_s0 + $0x28] sm:$0xff]  ;;  %v17_v8 = vld [vmem:[%s3395_s0 + $0x30] sm:$0xff]  ;;  %v19_v10 = vld [vmem:[%s3395_s0 + $0x40] sm:$0xff] }
   0x4   :  { %v20_v9 = vld [vmem:[%s3395_s0 + $0x48] sm:$0xff]  ;;  %v22_v11 = vld [vmem:[%s3395_s0 + $0x58] sm:$0xff]  ;;  %v21_v12 = vld [vmem:[%s3395_s0 + $0x50] sm:$0xff] }
   0x5   :  { %v24_v13 = vld [vmem:[%s3395_s0 + $0x68] sm:$0xff]  ;;  %v23_v14 = vld [vmem:[%s3395_s0 + $0x60] sm:$0xff]  ;;  %v26_v15 = vld [vmem:[%s3395_s0 + $0x78] sm:$0xff] }
   0x6   :  { %388 = vperm.xlu1 %1458, %v14_v3   ;;  %378 = vperm.xlu0 %1457, %v12_v4   ;;  %v25_v16 = vld [vmem:[%s3395_s0 + $0x70] sm:$0xff]  ;;  %v28_v17 = vld [vmem:[%s3395_s0 + $0x88] sm:$0xff]  ;;  %v27_v18 = vld [vmem:[%s3395_s0 + $0x80] sm:$0xff] }
   0x7   :  { %v30_v19 = vld [vmem:[%s3395_s0 + $0x98] sm:$0xff]  ;;  %v29_v20 = vld [vmem:[%s3395_s0 + $0x90] sm:$0xff]  ;;  %v32_v21 = vld [vmem:[%s3395_s0 + $0xa8] sm:$0xff] }
   0x8   :  { %v31_v22 = vld [vmem:[%s3395_s0 + $0xa0] sm:$0xff]  ;;  %v34_v23 = vld [vmem:[%s3395_s0 + $0xb8] sm:$0xff]  ;;  %v33_v24 = vld [vmem:[%s3395_s0 + $0xb0] sm:$0xff] }
   0x9   :  { %v36_v25 = vld [vmem:[%s3395_s0 + $0xc8] sm:$0xff]  ;;  %v35_v26 = vld [vmem:[%s3395_s0 + $0xc0] sm:$0xff]  ;;  %v38_v27 = vld [vmem:[%s3395_s0 + $0xd8] sm:$0xff] }
   0xa   :  { %398 = vperm.xlu1 %1458, %v16_v5   ;;  %393 = vperm.xlu0 %1457, %v15_v6   ;;  %v37_v28 = vld [vmem:[%s3395_s0 + $0xd0] sm:$0xff]  ;;  %v40_v29 = vld [vmem:[%s3395_s0 + $0xe8] sm:$0xff]  ;;  %v39_v30 = vld [vmem:[%s3395_s0 + $0xe0] sm:$0xff] }
   0xb   :  { %v42_v31 = vld [vmem:[%s3395_s0 + $0xf8] sm:$0xff]  ;;  %v41_v32 = vld [vmem:[%s3395_s0 + $0xf0] sm:$0xff]  ;;  %v44_v33 = vld [vmem:[%s3395_s0 + $0x108] sm:$0xff] }
   0xc   :  { %v43_v34 = vld [vmem:[%s3395_s0 + $0x100] sm:$0xff]  ;;  %v46_v35 = vld [vmem:[%s3395_s0 + $0x118] sm:$0xff]  ;;  %v45_v36 = vld [vmem:[%s3395_s0 + $0x110] sm:$0xff] }
   0xd   :  { %v48_v37 = vld [vmem:[%s3395_s0 + $0x128] sm:$0xff]  ;;  %v47_v38 = vld [vmem:[%s3395_s0 + $0x120] sm:$0xff]  ;;  %v50_v39 = vld [vmem:[%s3395_s0 + $0x138] sm:$0xff] }
   0xe   :  { %408 = vperm.xlu1 %1458, %v18_v7   ;;  %403 = vperm.xlu0 %1457, %v17_v8   ;;  %v49_v40 = vld [vmem:[%s3395_s0 + $0x130] sm:$0xff]  ;;  %v52_v41 = vld [vmem:[%s3395_s0 + $0x148] sm:$0xff]  ;;  %v51_v42 = vld [vmem:[%s3395_s0 + $0x140] sm:$0xff] }
   0xf   :  { %v54_v43 = vld [vmem:[%s3395_s0 + $0x158] sm:$0xff]  ;;  %v53_v44 = vld [vmem:[%s3395_s0 + $0x150] sm:$0xff]  ;;  %v56_v45 = vld [vmem:[%s3395_s0 + $0x168] sm:$0xff] }
  0x10   :  { %v55_v46 = vld [vmem:[%s3395_s0 + $0x160] sm:$0xff]  ;;  %v58_v47 = vld [vmem:[%s3395_s0 + $0x178] sm:$0xff]  ;;  %v57_v48 = vld [vmem:[%s3395_s0 + $0x170] sm:$0xff] }
  0x11   :  { %v60_v49 = vld [vmem:[%s3395_s0 + $0x188] sm:$0xff]  ;;  %v59_v50 = vld [vmem:[%s3395_s0 + $0x180] sm:$0xff]  ;;  %v62_v51 = vld [vmem:[%s3395_s0 + $0x198] sm:$0xff] }
  0x12   :  { %418 = vperm.xlu1 %1458, %v20_v9   ;;  %413 = vperm.xlu0 %1457, %v19_v10   ;;  %v61_v52 = vld [vmem:[%s3395_s0 + $0x190] sm:$0xff]  ;;  %v64_v53 = vld [vmem:[%s3395_s0 + $0x1a8] sm:$0xff]  ;;  %v63_v54 = vld [vmem:[%s3395_s0 + $0x1a0] sm:$0xff] }
  0x13   :  { %v66_v55 = vld [vmem:[%s3395_s0 + $0x1b8] sm:$0xff]  ;;  %v65_v56 = vld [vmem:[%s3395_s0 + $0x1b0] sm:$0xff]  ;;  %v68_v57 = vld [vmem:[%s3395_s0 + $0x1c8] sm:$0xff] }
  0x14   :  { %v67_v58 = vld [vmem:[%s3395_s0 + $0x1c0] sm:$0xff]  ;;  %v70_v59 = vld [vmem:[%s3395_s0 + $0x1d8] sm:$0xff]  ;;  %v69_v60 = vld [vmem:[%s3395_s0 + $0x1d0] sm:$0xff] }
  0x15   :  { %v72_v61 = vld [vmem:[%s3395_s0 + $0x1e8] sm:$0xff]  ;;  %v71_v62 = vld [vmem:[%s3395_s0 + $0x1e0] sm:$0xff]  ;;  %v74_v63 = vld [vmem:[%s3395_s0 + $0x1f8] sm:$0xff] }
  0x16   :  { %428 = vperm.xlu1 %1458, %v22_v11   ;;  %423 = vperm.xlu0 %1457, %v21_v12   ;;  %v73_v0 = vld [vmem:[%s3395_s0 + $0x1f0] sm:$0xff]  ;;  %v135_v1 = vld [vmem:[%s3396_s1 + $0x20] sm:$0xff]  ;;  %v136_v2 = vld [vmem:[%s3396_s1 + $0x28] sm:$0xff] }
  0x17   :  { %v131_v3 = vld [vmem:[%s3396_s1] sm:$0xff]  ;;  %v132_v4 = vld [vmem:[%s3396_s1 + $0x8] sm:$0xff] }
  0x18   :  { %v76_v5 = vld [vmem:[%s3395_s0 + $0x208] sm:$0xff]  ;;  %v75_v6 = vld [vmem:[%s3395_s0 + $0x200] sm:$0xff] }
  0x1a   :  { %438 = vperm.xlu1 %1458, %v24_v13   ;;  %433 = vperm.xlu0 %1457, %v23_v14   ;;  %v137_v13 = vld [vmem:[%s3396_s1 + $0x30] sm:$0xff]  ;;  %v138_v14 = vld [vmem:[%s3396_s1 + $0x38] sm:$0xff] }
  0x1e   :  { %448 = vperm.xlu1 %1458, %v26_v15   ;;  %443 = vperm.xlu0 %1457, %v25_v16   ;;  %v133_v15 = vld [vmem:[%s3396_s1 + $0x10] sm:$0xff]  ;;  %v134_v16 = vld [vmem:[%s3396_s1 + $0x18] sm:$0xff] }
  0x22   :  { %458 = vperm.xlu1 %1458, %v28_v17   ;;  %453 = vperm.xlu0 %1457, %v27_v18   ;;  %v78_v17 = vld [vmem:[%s3395_s0 + $0x218] sm:$0xff]  ;;  %v77_v18 = vld [vmem:[%s3395_s0 + $0x210] sm:$0xff] }
  0x26   :  { %468 = vperm.xlu1 %1458, %v30_v19   ;;  %463 = vperm.xlu0 %1457, %v29_v20  }
  0x2a   :  { %478 = vperm.xlu1 %1458, %v32_v21   ;;  %473 = vperm.xlu0 %1457, %v31_v22  }
  0x2e   :  { %488 = vperm.xlu1 %1458, %v34_v23   ;;  %483 = vperm.xlu0 %1457, %v33_v24  }
  0x32   :  { %498 = vperm.xlu1 %1458, %v36_v25   ;;  %493 = vperm.xlu0 %1457, %v35_v26   ;;  %v141_v25 = vld [vmem:[%s3396_s1 + $0x50] sm:$0xff]  ;;  %v142_v26 = vld [vmem:[%s3396_s1 + $0x58] sm:$0xff] }
  0x36   :  { %508 = vperm.xlu1 %1458, %v38_v27   ;;  %503 = vperm.xlu0 %1457, %v37_v28   ;;  %v139_v27 = vld [vmem:[%s3396_s1 + $0x40] sm:$0xff]  ;;  %v140_v28 = vld [vmem:[%s3396_s1 + $0x48] sm:$0xff] }
  0x3a   :  { %518 = vperm.xlu1 %1458, %v40_v29   ;;  %513 = vperm.xlu0 %1457, %v39_v30   ;;  %v80_v29 = vld [vmem:[%s3395_s0 + $0x228] sm:$0xff]  ;;  %v79_v30 = vld [vmem:[%s3395_s0 + $0x220] sm:$0xff] }
  0x3e   :  { %528 = vperm.xlu1 %1458, %v42_v31   ;;  %523 = vperm.xlu0 %1457, %v41_v32  }
  0x42   :  { %538 = vperm.xlu1 %1458, %v44_v33   ;;  %533 = vperm.xlu0 %1457, %v43_v34  }
  0x46   :  { %548 = vperm.xlu1 %1458, %v46_v35   ;;  %543 = vperm.xlu0 %1457, %v45_v36  }
  0x4a   :  { %558 = vperm.xlu1 %1458, %v48_v37   ;;  %553 = vperm.xlu0 %1457, %v47_v38   ;;  %v145_v37 = vld [vmem:[%s3396_s1 + $0x70] sm:$0xff]  ;;  %v146_v38 = vld [vmem:[%s3396_s1 + $0x78] sm:$0xff] }
  0x4e   :  { %568 = vperm.xlu1 %1458, %v50_v39   ;;  %563 = vperm.xlu0 %1457, %v49_v40   ;;  %v143_v39 = vld [vmem:[%s3396_s1 + $0x60] sm:$0xff]  ;;  %v144_v40 = vld [vmem:[%s3396_s1 + $0x68] sm:$0xff] }
  0x52   :  { %578 = vperm.xlu1 %1458, %v52_v41   ;;  %573 = vperm.xlu0 %1457, %v51_v42   ;;  %v82_v41 = vld [vmem:[%s3395_s0 + $0x238] sm:$0xff]  ;;  %v81_v42 = vld [vmem:[%s3395_s0 + $0x230] sm:$0xff] }
  0x56   :  { %588 = vperm.xlu1 %1458, %v54_v43   ;;  %583 = vperm.xlu0 %1457, %v53_v44  }
  0x5a   :  { %598 = vperm.xlu1 %1458, %v56_v45   ;;  %593 = vperm.xlu0 %1457, %v55_v46  }
  0x5e   :  { %608 = vperm.xlu1 %1458, %v58_v47   ;;  %603 = vperm.xlu0 %1457, %v57_v48  }
  0x62   :  { %618 = vperm.xlu1 %1458, %v60_v49   ;;  %613 = vperm.xlu0 %1457, %v59_v50   ;;  %v149_v49 = vld [vmem:[%s3396_s1 + $0x90] sm:$0xff]  ;;  %v150_v50 = vld [vmem:[%s3396_s1 + $0x98] sm:$0xff] }
  0x66   :  { %628 = vperm.xlu1 %1458, %v62_v51   ;;  %623 = vperm.xlu0 %1457, %v61_v52   ;;  %v147_v51 = vld [vmem:[%s3396_s1 + $0x80] sm:$0xff]  ;;  %v148_v52 = vld [vmem:[%s3396_s1 + $0x88] sm:$0xff] }
  0x6a   :  { %638 = vperm.xlu1 %1458, %v64_v53   ;;  %633 = vperm.xlu0 %1457, %v63_v54   ;;  %v84_v53 = vld [vmem:[%s3395_s0 + $0x248] sm:$0xff]  ;;  %v83_v54 = vld [vmem:[%s3395_s0 + $0x240] sm:$0xff] }
  0x6e   :  { %648 = vperm.xlu1 %1458, %v66_v55   ;;  %643 = vperm.xlu0 %1457, %v65_v56  }
  0x72   :  { %658 = vperm.xlu1 %1458, %v68_v57   ;;  %653 = vperm.xlu0 %1457, %v67_v58  }
  0x76   :  { %668 = vperm.xlu1 %1458, %v70_v59   ;;  %663 = vperm.xlu0 %1457, %v69_v60  }
  0x7a   :  { %678 = vperm.xlu1 %1458, %v72_v61   ;;  %673 = vperm.xlu0 %1457, %v71_v62   ;;  %v153_v61 = vld [vmem:[%s3396_s1 + $0xb0] sm:$0xff]  ;;  %v154_v62 = vld [vmem:[%s3396_s1 + $0xb8] sm:$0xff] }
  0x7e   :  { %688 = vperm.xlu1 %1458, %v74_v63   ;;  %683 = vperm.xlu0 %1457, %v73_v0   ;;  %v151_v63 = vld [vmem:[%s3396_s1 + $0xa0] sm:$0xff]  ;;  %v152_v0 = vld [vmem:[%s3396_s1 + $0xa8] sm:$0xff] }
  0x81   :  { %v384_v7 = vpop.permute.xlu1 %383  ;;  %v374_v8 = vpop.permute.xlu0 %373 }
  0x82   :  { %v975_v9 = vmul.f32 %v384_v7, %v135_v1  ;;  %v976_v10 = vmul.f32 %v384_v7, %v136_v2  ;;  %v971_v11 = vmul.f32 %v374_v8, %v131_v3  ;;  %v972_v12 = vmul.f32 %v374_v8, %v132_v4  ;;  %698 = vperm.xlu1 %1458, %v76_v5   ;;  %v86_v1 = vld [vmem:[%s3395_s0 + $0x258] sm:$0xff]  ;;  %v85_v2 = vld [vmem:[%s3395_s0 + $0x250] sm:$0xff] }
  0x83   :  { %693 = vperm.xlu0 %1457, %v75_v6  }
  0x84   :  { %1216 = vst [vmem:[%s3397_s2 + $0x20] sm:$0xff] %v975_v9  ;;  %1217 = vst.msk [vmem:[%s3397_s2 + $0x28] sm:$0xff] %vm1212_vm0, %v976_v10  ;;  %v157_v9 = vld [vmem:[%s3396_s1 + $0xd0] sm:$0xff]  ;;  %v158_v10 = vld [vmem:[%s3396_s1 + $0xd8] sm:$0xff] }
  0x85   :  { %1211 = vst [vmem:[%s3397_s2] sm:$0xff] %v971_v11  ;;  %1213 = vst.msk [vmem:[%s3397_s2 + $0x8] sm:$0xff] %vm1212_vm0, %v972_v12  ;;  %v389_v19 = vpop.permute.xlu1 %388  ;;  %v379_v20 = vpop.permute.xlu0 %378  ;;  %v155_v11 = vld [vmem:[%s3396_s1 + $0xc0] sm:$0xff]  ;;  %v156_v12 = vld [vmem:[%s3396_s1 + $0xc8] sm:$0xff] }
  0x86   :  { %v977_v21 = vmul.f32 %v389_v19, %v137_v13  ;;  %v978_v22 = vmul.f32 %v389_v19, %v138_v14  ;;  %v973_v23 = vmul.f32 %v379_v20, %v133_v15  ;;  %v974_v24 = vmul.f32 %v379_v20, %v134_v16  ;;  %708 = vperm.xlu1 %1458, %v78_v17   ;;  %v88_v13 = vld [vmem:[%s3395_s0 + $0x268] sm:$0xff]  ;;  %v87_v14 = vld [vmem:[%s3395_s0 + $0x260] sm:$0xff] }
  0x87   :  { %703 = vperm.xlu0 %1457, %v77_v18  }
  0x88   :  { %1218 = vst [vmem:[%s3397_s2 + $0x30] sm:$0xff] %v977_v21  ;;  %1219 = vst.msk [vmem:[%s3397_s2 + $0x38] sm:$0xff] %vm1212_vm0, %v978_v22  ;;  %v161_v21 = vld [vmem:[%s3396_s1 + $0xf0] sm:$0xff]  ;;  %v162_v22 = vld [vmem:[%s3396_s1 + $0xf8] sm:$0xff] }
  0x89   :  { %1214 = vst [vmem:[%s3397_s2 + $0x10] sm:$0xff] %v973_v23  ;;  %1215 = vst.msk [vmem:[%s3397_s2 + $0x18] sm:$0xff] %vm1212_vm0, %v974_v24  ;;  %v399_v31 = vpop.permute.xlu1 %398  ;;  %v394_v32 = vpop.permute.xlu0 %393  ;;  %v159_v23 = vld [vmem:[%s3396_s1 + $0xe0] sm:$0xff]  ;;  %v160_v24 = vld [vmem:[%s3396_s1 + $0xe8] sm:$0xff] }
  0x8a   :  { %v981_v33 = vmul.f32 %v399_v31, %v141_v25  ;;  %v982_v34 = vmul.f32 %v399_v31, %v142_v26  ;;  %v979_v35 = vmul.f32 %v394_v32, %v139_v27  ;;  %v980_v36 = vmul.f32 %v394_v32, %v140_v28  ;;  %718 = vperm.xlu1 %1458, %v80_v29   ;;  %v90_v25 = vld [vmem:[%s3395_s0 + $0x278] sm:$0xff]  ;;  %v89_v26 = vld [vmem:[%s3395_s0 + $0x270] sm:$0xff] }
  0x8b   :  { %713 = vperm.xlu0 %1457, %v79_v30  }
  0x8c   :  { %1222 = vst [vmem:[%s3397_s2 + $0x50] sm:$0xff] %v981_v33  ;;  %1223 = vst.msk [vmem:[%s3397_s2 + $0x58] sm:$0xff] %vm1212_vm0, %v982_v34  ;;  %v165_v33 = vld [vmem:[%s3396_s1 + $0x110] sm:$0xff]  ;;  %v166_v34 = vld [vmem:[%s3396_s1 + $0x118] sm:$0xff] }
  0x8d   :  { %1220 = vst [vmem:[%s3397_s2 + $0x40] sm:$0xff] %v979_v35  ;;  %1221 = vst.msk [vmem:[%s3397_s2 + $0x48] sm:$0xff] %vm1212_vm0, %v980_v36  ;;  %v409_v43 = vpop.permute.xlu1 %408  ;;  %v404_v44 = vpop.permute.xlu0 %403  ;;  %v163_v35 = vld [vmem:[%s3396_s1 + $0x100] sm:$0xff]  ;;  %v164_v36 = vld [vmem:[%s3396_s1 + $0x108] sm:$0xff] }
  0x8e   :  { %v985_v45 = vmul.f32 %v409_v43, %v145_v37  ;;  %v986_v46 = vmul.f32 %v409_v43, %v146_v38  ;;  %v983_v47 = vmul.f32 %v404_v44, %v143_v39  ;;  %v984_v48 = vmul.f32 %v404_v44, %v144_v40  ;;  %728 = vperm.xlu1 %1458, %v82_v41   ;;  %v92_v37 = vld [vmem:[%s3395_s0 + $0x288] sm:$0xff]  ;;  %v91_v38 = vld [vmem:[%s3395_s0 + $0x280] sm:$0xff] }
  0x8f   :  { %723 = vperm.xlu0 %1457, %v81_v42  }
  0x90   :  { %1226 = vst [vmem:[%s3397_s2 + $0x70] sm:$0xff] %v985_v45  ;;  %1227 = vst.msk [vmem:[%s3397_s2 + $0x78] sm:$0xff] %vm1212_vm0, %v986_v46  ;;  %v169_v45 = vld [vmem:[%s3396_s1 + $0x130] sm:$0xff]  ;;  %v170_v46 = vld [vmem:[%s3396_s1 + $0x138] sm:$0xff] }
  0x91   :  { %1224 = vst [vmem:[%s3397_s2 + $0x60] sm:$0xff] %v983_v47  ;;  %1225 = vst.msk [vmem:[%s3397_s2 + $0x68] sm:$0xff] %vm1212_vm0, %v984_v48  ;;  %v419_v55 = vpop.permute.xlu1 %418  ;;  %v414_v56 = vpop.permute.xlu0 %413  ;;  %v167_v47 = vld [vmem:[%s3396_s1 + $0x120] sm:$0xff]  ;;  %v168_v48 = vld [vmem:[%s3396_s1 + $0x128] sm:$0xff] }
  0x92   :  { %v989_v57 = vmul.f32 %v419_v55, %v149_v49  ;;  %v990_v58 = vmul.f32 %v419_v55, %v150_v50  ;;  %v987_v59 = vmul.f32 %v414_v56, %v147_v51  ;;  %v988_v60 = vmul.f32 %v414_v56, %v148_v52  ;;  %738 = vperm.xlu1 %1458, %v84_v53   ;;  %v94_v49 = vld [vmem:[%s3395_s0 + $0x298] sm:$0xff]  ;;  %v93_v50 = vld [vmem:[%s3395_s0 + $0x290] sm:$0xff] }
  0x93   :  { %733 = vperm.xlu0 %1457, %v83_v54  }
  0x94   :  { %1230 = vst [vmem:[%s3397_s2 + $0x90] sm:$0xff] %v989_v57  ;;  %1231 = vst.msk [vmem:[%s3397_s2 + $0x98] sm:$0xff] %vm1212_vm0, %v990_v58  ;;  %v173_v57 = vld [vmem:[%s3396_s1 + $0x150] sm:$0xff]  ;;  %v174_v58 = vld [vmem:[%s3396_s1 + $0x158] sm:$0xff] }
  0x95   :  { %1228 = vst [vmem:[%s3397_s2 + $0x80] sm:$0xff] %v987_v59  ;;  %1229 = vst.msk [vmem:[%s3397_s2 + $0x88] sm:$0xff] %vm1212_vm0, %v988_v60  ;;  %v429_v3 = vpop.permute.xlu1 %428  ;;  %v424_v4 = vpop.permute.xlu0 %423  ;;  %v171_v59 = vld [vmem:[%s3396_s1 + $0x140] sm:$0xff]  ;;  %v172_v60 = vld [vmem:[%s3396_s1 + $0x148] sm:$0xff] }
  0x96   :  { %v993_v5 = vmul.f32 %v429_v3, %v153_v61  ;;  %v994_v6 = vmul.f32 %v429_v3, %v154_v62  ;;  %v991_v7 = vmul.f32 %v424_v4, %v151_v63  ;;  %v992_v8 = vmul.f32 %v424_v4, %v152_v0  ;;  %748 = vperm.xlu1 %1458, %v86_v1   ;;  %v96_v61 = vld [vmem:[%s3395_s0 + $0x2a8] sm:$0xff]  ;;  %v95_v62 = vld [vmem:[%s3395_s0 + $0x2a0] sm:$0xff] }
  0x97   :  { %743 = vperm.xlu0 %1457, %v85_v2  }
  0x98   :  { %1234 = vst [vmem:[%s3397_s2 + $0xb0] sm:$0xff] %v993_v5  ;;  %1235 = vst.msk [vmem:[%s3397_s2 + $0xb8] sm:$0xff] %vm1212_vm0, %v994_v6  ;;  %v177_v5 = vld [vmem:[%s3396_s1 + $0x170] sm:$0xff]  ;;  %v178_v6 = vld [vmem:[%s3396_s1 + $0x178] sm:$0xff] }
  0x99   :  { %1232 = vst [vmem:[%s3397_s2 + $0xa0] sm:$0xff] %v991_v7  ;;  %1233 = vst.msk [vmem:[%s3397_s2 + $0xa8] sm:$0xff] %vm1212_vm0, %v992_v8  ;;  %v439_v15 = vpop.permute.xlu1 %438  ;;  %v434_v16 = vpop.permute.xlu0 %433  ;;  %v175_v7 = vld [vmem:[%s3396_s1 + $0x160] sm:$0xff]  ;;  %v176_v8 = vld [vmem:[%s3396_s1 + $0x168] sm:$0xff] }
  0x9a   :  { %v997_v17 = vmul.f32 %v439_v15, %v157_v9  ;;  %v998_v18 = vmul.f32 %v439_v15, %v158_v10  ;;  %v995_v19 = vmul.f32 %v434_v16, %v155_v11  ;;  %v996_v20 = vmul.f32 %v434_v16, %v156_v12  ;;  %758 = vperm.xlu1 %1458, %v88_v13   ;;  %v98_v9 = vld [vmem:[%s3395_s0 + $0x2b8] sm:$0xff]  ;;  %v97_v10 = vld [vmem:[%s3395_s0 + $0x2b0] sm:$0xff] }
  0x9b   :  { %753 = vperm.xlu0 %1457, %v87_v14  }
  0x9c   :  { %1238 = vst [vmem:[%s3397_s2 + $0xd0] sm:$0xff] %v997_v17  ;;  %1239 = vst.msk [vmem:[%s3397_s2 + $0xd8] sm:$0xff] %vm1212_vm0, %v998_v18  ;;  %v181_v17 = vld [vmem:[%s3396_s1 + $0x190] sm:$0xff]  ;;  %v182_v18 = vld [vmem:[%s3396_s1 + $0x198] sm:$0xff] }
  0x9d   :  { %1236 = vst [vmem:[%s3397_s2 + $0xc0] sm:$0xff] %v995_v19  ;;  %1237 = vst.msk [vmem:[%s3397_s2 + $0xc8] sm:$0xff] %vm1212_vm0, %v996_v20  ;;  %v449_v27 = vpop.permute.xlu1 %448  ;;  %v444_v28 = vpop.permute.xlu0 %443  ;;  %v179_v19 = vld [vmem:[%s3396_s1 + $0x180] sm:$0xff]  ;;  %v180_v20 = vld [vmem:[%s3396_s1 + $0x188] sm:$0xff] }
  0x9e   :  { %v1001_v29 = vmul.f32 %v449_v27, %v161_v21  ;;  %v1002_v30 = vmul.f32 %v449_v27, %v162_v22  ;;  %v999_v31 = vmul.f32 %v444_v28, %v159_v23  ;;  %v1000_v32 = vmul.f32 %v444_v28, %v160_v24  ;;  %768 = vperm.xlu1 %1458, %v90_v25   ;;  %v100_v21 = vld [vmem:[%s3395_s0 + $0x2c8] sm:$0xff]  ;;  %v99_v22 = vld [vmem:[%s3395_s0 + $0x2c0] sm:$0xff] }
  0x9f   :  { %763 = vperm.xlu0 %1457, %v89_v26  }
  0xa0   :  { %1242 = vst [vmem:[%s3397_s2 + $0xf0] sm:$0xff] %v1001_v29  ;;  %1243 = vst.msk [vmem:[%s3397_s2 + $0xf8] sm:$0xff] %vm1212_vm0, %v1002_v30  ;;  %v185_v29 = vld [vmem:[%s3396_s1 + $0x1b0] sm:$0xff]  ;;  %v186_v30 = vld [vmem:[%s3396_s1 + $0x1b8] sm:$0xff] }
  0xa1   :  { %1240 = vst [vmem:[%s3397_s2 + $0xe0] sm:$0xff] %v999_v31  ;;  %1241 = vst.msk [vmem:[%s3397_s2 + $0xe8] sm:$0xff] %vm1212_vm0, %v1000_v32  ;;  %v459_v39 = vpop.permute.xlu1 %458  ;;  %v454_v40 = vpop.permute.xlu0 %453  ;;  %v183_v31 = vld [vmem:[%s3396_s1 + $0x1a0] sm:$0xff]  ;;  %v184_v32 = vld [vmem:[%s3396_s1 + $0x1a8] sm:$0xff] }
  0xa2   :  { %v1005_v41 = vmul.f32 %v459_v39, %v165_v33  ;;  %v1006_v42 = vmul.f32 %v459_v39, %v166_v34  ;;  %v1003_v43 = vmul.f32 %v454_v40, %v163_v35  ;;  %v1004_v44 = vmul.f32 %v454_v40, %v164_v36  ;;  %778 = vperm.xlu1 %1458, %v92_v37   ;;  %v102_v33 = vld [vmem:[%s3395_s0 + $0x2d8] sm:$0xff]  ;;  %v101_v34 = vld [vmem:[%s3395_s0 + $0x2d0] sm:$0xff] }
  0xa3   :  { %773 = vperm.xlu0 %1457, %v91_v38  }
  0xa4   :  { %1246 = vst [vmem:[%s3397_s2 + $0x110] sm:$0xff] %v1005_v41  ;;  %1247 = vst.msk [vmem:[%s3397_s2 + $0x118] sm:$0xff] %vm1212_vm0, %v1006_v42  ;;  %v189_v41 = vld [vmem:[%s3396_s1 + $0x1d0] sm:$0xff]  ;;  %v190_v42 = vld [vmem:[%s3396_s1 + $0x1d8] sm:$0xff] }
  0xa5   :  { %1244 = vst [vmem:[%s3397_s2 + $0x100] sm:$0xff] %v1003_v43  ;;  %1245 = vst.msk [vmem:[%s3397_s2 + $0x108] sm:$0xff] %vm1212_vm0, %v1004_v44  ;;  %v469_v51 = vpop.permute.xlu1 %468  ;;  %v464_v52 = vpop.permute.xlu0 %463  ;;  %v187_v43 = vld [vmem:[%s3396_s1 + $0x1c0] sm:$0xff]  ;;  %v188_v44 = vld [vmem:[%s3396_s1 + $0x1c8] sm:$0xff] }
  0xa6   :  { %v1009_v53 = vmul.f32 %v469_v51, %v169_v45  ;;  %v1010_v54 = vmul.f32 %v469_v51, %v170_v46  ;;  %v1007_v55 = vmul.f32 %v464_v52, %v167_v47  ;;  %v1008_v56 = vmul.f32 %v464_v52, %v168_v48  ;;  %788 = vperm.xlu1 %1458, %v94_v49   ;;  %v104_v45 = vld [vmem:[%s3395_s0 + $0x2e8] sm:$0xff]  ;;  %v103_v46 = vld [vmem:[%s3395_s0 + $0x2e0] sm:$0xff] }
  0xa7   :  { %783 = vperm.xlu0 %1457, %v93_v50  }
  0xa8   :  { %1250 = vst [vmem:[%s3397_s2 + $0x130] sm:$0xff] %v1009_v53  ;;  %1251 = vst.msk [vmem:[%s3397_s2 + $0x138] sm:$0xff] %vm1212_vm0, %v1010_v54  ;;  %v193_v53 = vld [vmem:[%s3396_s1 + $0x1f0] sm:$0xff]  ;;  %v194_v54 = vld [vmem:[%s3396_s1 + $0x1f8] sm:$0xff] }
  0xa9   :  { %1248 = vst [vmem:[%s3397_s2 + $0x120] sm:$0xff] %v1007_v55  ;;  %1249 = vst.msk [vmem:[%s3397_s2 + $0x128] sm:$0xff] %vm1212_vm0, %v1008_v56  ;;  %v479_v63 = vpop.permute.xlu1 %478  ;;  %v474_v0 = vpop.permute.xlu0 %473  ;;  %v191_v55 = vld [vmem:[%s3396_s1 + $0x1e0] sm:$0xff]  ;;  %v192_v56 = vld [vmem:[%s3396_s1 + $0x1e8] sm:$0xff] }
  0xaa   :  { %v1013_v1 = vmul.f32 %v479_v63, %v173_v57  ;;  %v1014_v2 = vmul.f32 %v479_v63, %v174_v58  ;;  %v1011_v3 = vmul.f32 %v474_v0, %v171_v59  ;;  %v1012_v4 = vmul.f32 %v474_v0, %v172_v60  ;;  %798 = vperm.xlu1 %1458, %v96_v61   ;;  %v106_v57 = vld [vmem:[%s3395_s0 + $0x2f8] sm:$0xff]  ;;  %v105_v58 = vld [vmem:[%s3395_s0 + $0x2f0] sm:$0xff] }
  0xab   :  { %793 = vperm.xlu0 %1457, %v95_v62  }
  0xac   :  { %1254 = vst [vmem:[%s3397_s2 + $0x150] sm:$0xff] %v1013_v1  ;;  %1255 = vst.msk [vmem:[%s3397_s2 + $0x158] sm:$0xff] %vm1212_vm0, %v1014_v2  ;;  %v197_v1 = vld [vmem:[%s3396_s1 + $0x210] sm:$0xff]  ;;  %v198_v2 = vld [vmem:[%s3396_s1 + $0x218] sm:$0xff] }
  0xad   :  { %1252 = vst [vmem:[%s3397_s2 + $0x140] sm:$0xff] %v1011_v3  ;;  %1253 = vst.msk [vmem:[%s3397_s2 + $0x148] sm:$0xff] %vm1212_vm0, %v1012_v4  ;;  %v489_v11 = vpop.permute.xlu1 %488  ;;  %v484_v12 = vpop.permute.xlu0 %483  ;;  %v195_v3 = vld [vmem:[%s3396_s1 + $0x200] sm:$0xff]  ;;  %v196_v4 = vld [vmem:[%s3396_s1 + $0x208] sm:$0xff] }
  0xae   :  { %v1017_v13 = vmul.f32 %v489_v11, %v177_v5  ;;  %v1018_v14 = vmul.f32 %v489_v11, %v178_v6  ;;  %v1015_v15 = vmul.f32 %v484_v12, %v175_v7  ;;  %v1016_v16 = vmul.f32 %v484_v12, %v176_v8  ;;  %808 = vperm.xlu1 %1458, %v98_v9   ;;  %v108_v5 = vld [vmem:[%s3395_s0 + $0x308] sm:$0xff]  ;;  %v107_v6 = vld [vmem:[%s3395_s0 + $0x300] sm:$0xff] }
  0xaf   :  { %803 = vperm.xlu0 %1457, %v97_v10  }
  0xb0   :  { %1258 = vst [vmem:[%s3397_s2 + $0x170] sm:$0xff] %v1017_v13  ;;  %1259 = vst.msk [vmem:[%s3397_s2 + $0x178] sm:$0xff] %vm1212_vm0, %v1018_v14  ;;  %v201_v13 = vld [vmem:[%s3396_s1 + $0x230] sm:$0xff]  ;;  %v202_v14 = vld [vmem:[%s3396_s1 + $0x238] sm:$0xff] }
  0xb1   :  { %1256 = vst [vmem:[%s3397_s2 + $0x160] sm:$0xff] %v1015_v15  ;;  %1257 = vst.msk [vmem:[%s3397_s2 + $0x168] sm:$0xff] %vm1212_vm0, %v1016_v16  ;;  %v499_v23 = vpop.permute.xlu1 %498  ;;  %v494_v24 = vpop.permute.xlu0 %493  ;;  %v199_v15 = vld [vmem:[%s3396_s1 + $0x220] sm:$0xff]  ;;  %v200_v16 = vld [vmem:[%s3396_s1 + $0x228] sm:$0xff] }
  0xb2   :  { %v1021_v25 = vmul.f32 %v499_v23, %v181_v17  ;;  %v1022_v26 = vmul.f32 %v499_v23, %v182_v18  ;;  %v1019_v27 = vmul.f32 %v494_v24, %v179_v19  ;;  %v1020_v28 = vmul.f32 %v494_v24, %v180_v20  ;;  %818 = vperm.xlu1 %1458, %v100_v21   ;;  %v110_v17 = vld [vmem:[%s3395_s0 + $0x318] sm:$0xff]  ;;  %v109_v18 = vld [vmem:[%s3395_s0 + $0x310] sm:$0xff] }
  0xb3   :  { %813 = vperm.xlu0 %1457, %v99_v22  }
  0xb4   :  { %1262 = vst [vmem:[%s3397_s2 + $0x190] sm:$0xff] %v1021_v25  ;;  %1263 = vst.msk [vmem:[%s3397_s2 + $0x198] sm:$0xff] %vm1212_vm0, %v1022_v26  ;;  %v205_v25 = vld [vmem:[%s3396_s1 + $0x250] sm:$0xff]  ;;  %v206_v26 = vld [vmem:[%s3396_s1 + $0x258] sm:$0xff] }
  0xb5   :  { %1260 = vst [vmem:[%s3397_s2 + $0x180] sm:$0xff] %v1019_v27  ;;  %1261 = vst.msk [vmem:[%s3397_s2 + $0x188] sm:$0xff] %vm1212_vm0, %v1020_v28  ;;  %v509_v35 = vpop.permute.xlu1 %508  ;;  %v504_v36 = vpop.permute.xlu0 %503  ;;  %v203_v27 = vld [vmem:[%s3396_s1 + $0x240] sm:$0xff]  ;;  %v204_v28 = vld [vmem:[%s3396_s1 + $0x248] sm:$0xff] }
  0xb6   :  { %v1025_v37 = vmul.f32 %v509_v35, %v185_v29  ;;  %v1026_v38 = vmul.f32 %v509_v35, %v186_v30  ;;  %v1023_v39 = vmul.f32 %v504_v36, %v183_v31  ;;  %v1024_v40 = vmul.f32 %v504_v36, %v184_v32  ;;  %828 = vperm.xlu1 %1458, %v102_v33   ;;  %v112_v29 = vld [vmem:[%s3395_s0 + $0x328] sm:$0xff]  ;;  %v111_v30 = vld [vmem:[%s3395_s0 + $0x320] sm:$0xff] }
  0xb7   :  { %823 = vperm.xlu0 %1457, %v101_v34  }
  0xb8   :  { %1266 = vst [vmem:[%s3397_s2 + $0x1b0] sm:$0xff] %v1025_v37  ;;  %1267 = vst.msk [vmem:[%s3397_s2 + $0x1b8] sm:$0xff] %vm1212_vm0, %v1026_v38  ;;  %v209_v37 = vld [vmem:[%s3396_s1 + $0x270] sm:$0xff]  ;;  %v210_v38 = vld [vmem:[%s3396_s1 + $0x278] sm:$0xff] }
  0xb9   :  { %1264 = vst [vmem:[%s3397_s2 + $0x1a0] sm:$0xff] %v1023_v39  ;;  %1265 = vst.msk [vmem:[%s3397_s2 + $0x1a8] sm:$0xff] %vm1212_vm0, %v1024_v40  ;;  %v519_v47 = vpop.permute.xlu1 %518  ;;  %v514_v48 = vpop.permute.xlu0 %513  ;;  %v207_v39 = vld [vmem:[%s3396_s1 + $0x260] sm:$0xff]  ;;  %v208_v40 = vld [vmem:[%s3396_s1 + $0x268] sm:$0xff] }
  0xba   :  { %v1029_v49 = vmul.f32 %v519_v47, %v189_v41  ;;  %v1030_v50 = vmul.f32 %v519_v47, %v190_v42  ;;  %v1027_v51 = vmul.f32 %v514_v48, %v187_v43  ;;  %v1028_v52 = vmul.f32 %v514_v48, %v188_v44  ;;  %838 = vperm.xlu1 %1458, %v104_v45   ;;  %v114_v41 = vld [vmem:[%s3395_s0 + $0x338] sm:$0xff]  ;;  %v113_v42 = vld [vmem:[%s3395_s0 + $0x330] sm:$0xff] }
  0xbb   :  { %833 = vperm.xlu0 %1457, %v103_v46  }
  0xbc   :  { %1270 = vst [vmem:[%s3397_s2 + $0x1d0] sm:$0xff] %v1029_v49  ;;  %1271 = vst.msk [vmem:[%s3397_s2 + $0x1d8] sm:$0xff] %vm1212_vm0, %v1030_v50  ;;  %v213_v49 = vld [vmem:[%s3396_s1 + $0x290] sm:$0xff]  ;;  %v214_v50 = vld [vmem:[%s3396_s1 + $0x298] sm:$0xff] }
  0xbd   :  { %1268 = vst [vmem:[%s3397_s2 + $0x1c0] sm:$0xff] %v1027_v51  ;;  %1269 = vst.msk [vmem:[%s3397_s2 + $0x1c8] sm:$0xff] %vm1212_vm0, %v1028_v52  ;;  %v529_v59 = vpop.permute.xlu1 %528  ;;  %v524_v60 = vpop.permute.xlu0 %523  ;;  %v211_v51 = vld [vmem:[%s3396_s1 + $0x280] sm:$0xff]  ;;  %v212_v52 = vld [vmem:[%s3396_s1 + $0x288] sm:$0xff] }
  0xbe   :  { %v1033_v61 = vmul.f32 %v529_v59, %v193_v53  ;;  %v1034_v62 = vmul.f32 %v529_v59, %v194_v54  ;;  %v1031_v63 = vmul.f32 %v524_v60, %v191_v55  ;;  %v1032_v0 = vmul.f32 %v524_v60, %v192_v56  ;;  %848 = vperm.xlu1 %1458, %v106_v57   ;;  %v116_v53 = vld [vmem:[%s3395_s0 + $0x348] sm:$0xff]  ;;  %v115_v54 = vld [vmem:[%s3395_s0 + $0x340] sm:$0xff] }
  0xbf   :  { %843 = vperm.xlu0 %1457, %v105_v58  }
  0xc0   :  { %1274 = vst [vmem:[%s3397_s2 + $0x1f0] sm:$0xff] %v1033_v61  ;;  %1275 = vst.msk [vmem:[%s3397_s2 + $0x1f8] sm:$0xff] %vm1212_vm0, %v1034_v62  ;;  %v217_v61 = vld [vmem:[%s3396_s1 + $0x2b0] sm:$0xff]  ;;  %v218_v62 = vld [vmem:[%s3396_s1 + $0x2b8] sm:$0xff] }
  0xc1   :  { %1272 = vst [vmem:[%s3397_s2 + $0x1e0] sm:$0xff] %v1031_v63  ;;  %1273 = vst.msk [vmem:[%s3397_s2 + $0x1e8] sm:$0xff] %vm1212_vm0, %v1032_v0  ;;  %v539_v7 = vpop.permute.xlu1 %538  ;;  %v534_v8 = vpop.permute.xlu0 %533  ;;  %v215_v63 = vld [vmem:[%s3396_s1 + $0x2a0] sm:$0xff]  ;;  %v216_v0 = vld [vmem:[%s3396_s1 + $0x2a8] sm:$0xff] }
  0xc2   :  { %v1037_v9 = vmul.f32 %v539_v7, %v197_v1  ;;  %v1038_v10 = vmul.f32 %v539_v7, %v198_v2  ;;  %v1035_v11 = vmul.f32 %v534_v8, %v195_v3  ;;  %v1036_v12 = vmul.f32 %v534_v8, %v196_v4  ;;  %858 = vperm.xlu1 %1458, %v108_v5   ;;  %v118_v1 = vld [vmem:[%s3395_s0 + $0x358] sm:$0xff]  ;;  %v117_v2 = vld [vmem:[%s3395_s0 + $0x350] sm:$0xff] }
  0xc3   :  { %853 = vperm.xlu0 %1457, %v107_v6  }
  0xc4   :  { %1278 = vst [vmem:[%s3397_s2 + $0x210] sm:$0xff] %v1037_v9  ;;  %1279 = vst.msk [vmem:[%s3397_s2 + $0x218] sm:$0xff] %vm1212_vm0, %v1038_v10  ;;  %v221_v9 = vld [vmem:[%s3396_s1 + $0x2d0] sm:$0xff]  ;;  %v222_v10 = vld [vmem:[%s3396_s1 + $0x2d8] sm:$0xff] }
  0xc5   :  { %1276 = vst [vmem:[%s3397_s2 + $0x200] sm:$0xff] %v1035_v11  ;;  %1277 = vst.msk [vmem:[%s3397_s2 + $0x208] sm:$0xff] %vm1212_vm0, %v1036_v12  ;;  %v549_v19 = vpop.permute.xlu1 %548  ;;  %v544_v20 = vpop.permute.xlu0 %543  ;;  %v219_v11 = vld [vmem:[%s3396_s1 + $0x2c0] sm:$0xff]  ;;  %v220_v12 = vld [vmem:[%s3396_s1 + $0x2c8] sm:$0xff] }
  0xc6   :  { %v1041_v21 = vmul.f32 %v549_v19, %v201_v13  ;;  %v1042_v22 = vmul.f32 %v549_v19, %v202_v14  ;;  %v1039_v23 = vmul.f32 %v544_v20, %v199_v15  ;;  %v1040_v24 = vmul.f32 %v544_v20, %v200_v16  ;;  %868 = vperm.xlu1 %1458, %v110_v17   ;;  %v120_v13 = vld [vmem:[%s3395_s0 + $0x368] sm:$0xff]  ;;  %v119_v14 = vld [vmem:[%s3395_s0 + $0x360] sm:$0xff] }
  0xc7   :  { %863 = vperm.xlu0 %1457, %v109_v18  }
  0xc8   :  { %1282 = vst [vmem:[%s3397_s2 + $0x230] sm:$0xff] %v1041_v21  ;;  %1283 = vst.msk [vmem:[%s3397_s2 + $0x238] sm:$0xff] %vm1212_vm0, %v1042_v22  ;;  %v225_v21 = vld [vmem:[%s3396_s1 + $0x2f0] sm:$0xff]  ;;  %v226_v22 = vld [vmem:[%s3396_s1 + $0x2f8] sm:$0xff] }
  0xc9   :  { %1280 = vst [vmem:[%s3397_s2 + $0x220] sm:$0xff] %v1039_v23  ;;  %1281 = vst.msk [vmem:[%s3397_s2 + $0x228] sm:$0xff] %vm1212_vm0, %v1040_v24  ;;  %v559_v31 = vpop.permute.xlu1 %558  ;;  %v554_v32 = vpop.permute.xlu0 %553  ;;  %v223_v23 = vld [vmem:[%s3396_s1 + $0x2e0] sm:$0xff]  ;;  %v224_v24 = vld [vmem:[%s3396_s1 + $0x2e8] sm:$0xff] }
  0xca   :  { %v1045_v33 = vmul.f32 %v559_v31, %v205_v25  ;;  %v1046_v34 = vmul.f32 %v559_v31, %v206_v26  ;;  %v1043_v35 = vmul.f32 %v554_v32, %v203_v27  ;;  %v1044_v36 = vmul.f32 %v554_v32, %v204_v28  ;;  %878 = vperm.xlu1 %1458, %v112_v29   ;;  %v122_v25 = vld [vmem:[%s3395_s0 + $0x378] sm:$0xff]  ;;  %v121_v26 = vld [vmem:[%s3395_s0 + $0x370] sm:$0xff] }
  0xcb   :  { %873 = vperm.xlu0 %1457, %v111_v30  }
  0xcc   :  { %1286 = vst [vmem:[%s3397_s2 + $0x250] sm:$0xff] %v1045_v33  ;;  %1287 = vst.msk [vmem:[%s3397_s2 + $0x258] sm:$0xff] %vm1212_vm0, %v1046_v34  ;;  %v229_v33 = vld [vmem:[%s3396_s1 + $0x310] sm:$0xff]  ;;  %v230_v34 = vld [vmem:[%s3396_s1 + $0x318] sm:$0xff] }
  0xcd   :  { %1284 = vst [vmem:[%s3397_s2 + $0x240] sm:$0xff] %v1043_v35  ;;  %1285 = vst.msk [vmem:[%s3397_s2 + $0x248] sm:$0xff] %vm1212_vm0, %v1044_v36  ;;  %v569_v43 = vpop.permute.xlu1 %568  ;;  %v564_v44 = vpop.permute.xlu0 %563  ;;  %v227_v35 = vld [vmem:[%s3396_s1 + $0x300] sm:$0xff]  ;;  %v228_v36 = vld [vmem:[%s3396_s1 + $0x308] sm:$0xff] }
  0xce   :  { %v1049_v45 = vmul.f32 %v569_v43, %v209_v37  ;;  %v1050_v46 = vmul.f32 %v569_v43, %v210_v38  ;;  %v1047_v47 = vmul.f32 %v564_v44, %v207_v39  ;;  %v1048_v48 = vmul.f32 %v564_v44, %v208_v40  ;;  %888 = vperm.xlu1 %1458, %v114_v41   ;;  %v124_v37 = vld [vmem:[%s3395_s0 + $0x388] sm:$0xff]  ;;  %v123_v38 = vld [vmem:[%s3395_s0 + $0x380] sm:$0xff] }
  0xcf   :  { %883 = vperm.xlu0 %1457, %v113_v42  }
  0xd0   :  { %1290 = vst [vmem:[%s3397_s2 + $0x270] sm:$0xff] %v1049_v45  ;;  %1291 = vst.msk [vmem:[%s3397_s2 + $0x278] sm:$0xff] %vm1212_vm0, %v1050_v46  ;;  %v233_v45 = vld [vmem:[%s3396_s1 + $0x330] sm:$0xff]  ;;  %v234_v46 = vld [vmem:[%s3396_s1 + $0x338] sm:$0xff] }
  0xd1   :  { %1288 = vst [vmem:[%s3397_s2 + $0x260] sm:$0xff] %v1047_v47  ;;  %1289 = vst.msk [vmem:[%s3397_s2 + $0x268] sm:$0xff] %vm1212_vm0, %v1048_v48  ;;  %v579_v55 = vpop.permute.xlu1 %578  ;;  %v574_v56 = vpop.permute.xlu0 %573  ;;  %v231_v47 = vld [vmem:[%s3396_s1 + $0x320] sm:$0xff]  ;;  %v232_v48 = vld [vmem:[%s3396_s1 + $0x328] sm:$0xff] }
  0xd2   :  { %v1053_v57 = vmul.f32 %v579_v55, %v213_v49  ;;  %v1054_v58 = vmul.f32 %v579_v55, %v214_v50  ;;  %v1051_v59 = vmul.f32 %v574_v56, %v211_v51  ;;  %v1052_v60 = vmul.f32 %v574_v56, %v212_v52  ;;  %898 = vperm.xlu1 %1458, %v116_v53   ;;  %v126_v49 = vld [vmem:[%s3395_s0 + $0x398] sm:$0xff]  ;;  %v125_v50 = vld [vmem:[%s3395_s0 + $0x390] sm:$0xff] }
  0xd3   :  { %893 = vperm.xlu0 %1457, %v115_v54  }
  0xd4   :  { %1294 = vst [vmem:[%s3397_s2 + $0x290] sm:$0xff] %v1053_v57  ;;  %1295 = vst.msk [vmem:[%s3397_s2 + $0x298] sm:$0xff] %vm1212_vm0, %v1054_v58  ;;  %v237_v57 = vld [vmem:[%s3396_s1 + $0x350] sm:$0xff]  ;;  %v238_v58 = vld [vmem:[%s3396_s1 + $0x358] sm:$0xff] }
  0xd5   :  { %1292 = vst [vmem:[%s3397_s2 + $0x280] sm:$0xff] %v1051_v59  ;;  %1293 = vst.msk [vmem:[%s3397_s2 + $0x288] sm:$0xff] %vm1212_vm0, %v1052_v60  ;;  %v589_v3 = vpop.permute.xlu1 %588  ;;  %v584_v4 = vpop.permute.xlu0 %583  ;;  %v235_v59 = vld [vmem:[%s3396_s1 + $0x340] sm:$0xff]  ;;  %v236_v60 = vld [vmem:[%s3396_s1 + $0x348] sm:$0xff] }
  0xd6   :  { %v1057_v5 = vmul.f32 %v589_v3, %v217_v61  ;;  %v1058_v6 = vmul.f32 %v589_v3, %v218_v62  ;;  %v1055_v7 = vmul.f32 %v584_v4, %v215_v63  ;;  %v1056_v8 = vmul.f32 %v584_v4, %v216_v0  ;;  %908 = vperm.xlu1 %1458, %v118_v1   ;;  %v128_v61 = vld [vmem:[%s3395_s0 + $0x3a8] sm:$0xff]  ;;  %v127_v62 = vld [vmem:[%s3395_s0 + $0x3a0] sm:$0xff] }
  0xd7   :  { %903 = vperm.xlu0 %1457, %v117_v2  }
  0xd8   :  { %1298 = vst [vmem:[%s3397_s2 + $0x2b0] sm:$0xff] %v1057_v5  ;;  %1299 = vst.msk [vmem:[%s3397_s2 + $0x2b8] sm:$0xff] %vm1212_vm0, %v1058_v6  ;;  %v241_v5 = vld [vmem:[%s3396_s1 + $0x370] sm:$0xff]  ;;  %v242_v6 = vld [vmem:[%s3396_s1 + $0x378] sm:$0xff] }
  0xd9   :  { %1296 = vst [vmem:[%s3397_s2 + $0x2a0] sm:$0xff] %v1055_v7  ;;  %1297 = vst.msk [vmem:[%s3397_s2 + $0x2a8] sm:$0xff] %vm1212_vm0, %v1056_v8  ;;  %v599_v15 = vpop.permute.xlu1 %598  ;;  %v594_v16 = vpop.permute.xlu0 %593  ;;  %v239_v7 = vld [vmem:[%s3396_s1 + $0x360] sm:$0xff]  ;;  %v240_v8 = vld [vmem:[%s3396_s1 + $0x368] sm:$0xff] }
  0xda   :  { %v1061_v17 = vmul.f32 %v599_v15, %v221_v9  ;;  %v1062_v18 = vmul.f32 %v599_v15, %v222_v10  ;;  %v1059_v19 = vmul.f32 %v594_v16, %v219_v11  ;;  %v1060_v20 = vmul.f32 %v594_v16, %v220_v12  ;;  %918 = vperm.xlu1 %1458, %v120_v13   ;;  %v130_v9 = vld [vmem:[%s3395_s0 + $0x3b8] sm:$0xff]  ;;  %v129_v10 = vld [vmem:[%s3395_s0 + $0x3b0] sm:$0xff] }
  0xdb   :  { %913 = vperm.xlu0 %1457, %v119_v14  }
  0xdc   :  { %1302 = vst [vmem:[%s3397_s2 + $0x2d0] sm:$0xff] %v1061_v17  ;;  %1303 = vst.msk [vmem:[%s3397_s2 + $0x2d8] sm:$0xff] %vm1212_vm0, %v1062_v18  ;;  %v245_v17 = vld [vmem:[%s3396_s1 + $0x390] sm:$0xff]  ;;  %v246_v18 = vld [vmem:[%s3396_s1 + $0x398] sm:$0xff] }
  0xdd   :  { %1300 = vst [vmem:[%s3397_s2 + $0x2c0] sm:$0xff] %v1059_v19  ;;  %1301 = vst.msk [vmem:[%s3397_s2 + $0x2c8] sm:$0xff] %vm1212_vm0, %v1060_v20  ;;  %v609_v27 = vpop.permute.xlu1 %608  ;;  %v604_v28 = vpop.permute.xlu0 %603  ;;  %v243_v19 = vld [vmem:[%s3396_s1 + $0x380] sm:$0xff]  ;;  %v244_v20 = vld [vmem:[%s3396_s1 + $0x388] sm:$0xff] }
  0xde   :  { %v1065_v29 = vmul.f32 %v609_v27, %v225_v21  ;;  %v1066_v30 = vmul.f32 %v609_v27, %v226_v22  ;;  %v1063_v31 = vmul.f32 %v604_v28, %v223_v23  ;;  %v1064_v32 = vmul.f32 %v604_v28, %v224_v24  ;;  %928 = vperm.xlu1 %1458, %v122_v25   ;;  %v249_v27 = vld [vmem:[%s3396_s1 + $0x3b0] sm:$0xff]  ;;  %v250_v28 = vld [vmem:[%s3396_s1 + $0x3b8] sm:$0xff] }
  0xdf   :  { %923 = vperm.xlu0 %1457, %v121_v26  }
  0xe0   :  { %1306 = vst [vmem:[%s3397_s2 + $0x2f0] sm:$0xff] %v1065_v29  ;;  %1307 = vst.msk [vmem:[%s3397_s2 + $0x2f8] sm:$0xff] %vm1212_vm0, %v1066_v30  ;;  %v247_v29 = vld [vmem:[%s3396_s1 + $0x3a0] sm:$0xff]  ;;  %v248_v30 = vld [vmem:[%s3396_s1 + $0x3a8] sm:$0xff] }
  0xe1   :  { %1304 = vst [vmem:[%s3397_s2 + $0x2e0] sm:$0xff] %v1063_v31  ;;  %1305 = vst.msk [vmem:[%s3397_s2 + $0x2e8] sm:$0xff] %vm1212_vm0, %v1064_v32  ;;  %v619_v39 = vpop.permute.xlu1 %618  ;;  %v614_v40 = vpop.permute.xlu0 %613 }
  0xe2   :  { %v1069_v41 = vmul.f32 %v619_v39, %v229_v33  ;;  %v1070_v42 = vmul.f32 %v619_v39, %v230_v34  ;;  %v1067_v43 = vmul.f32 %v614_v40, %v227_v35  ;;  %v1068_v44 = vmul.f32 %v614_v40, %v228_v36  ;;  %938 = vperm.xlu1 %1458, %v124_v37   ;;  %v253_v37 = vld [vmem:[%s3396_s1 + $0x3d0] sm:$0xff]  ;;  %v251_v39 = vld [vmem:[%s3396_s1 + $0x3c0] sm:$0xff]  ;;  %v252_v40 = vld [vmem:[%s3396_s1 + $0x3c8] sm:$0xff] }
  0xe3   :  { %933 = vperm.xlu0 %1457, %v123_v38   ;;  %v254_v38 = vld [vmem:[%s3396_s1 + $0x3d8] sm:$0xff] }
  0xe4   :  { %1310 = vst [vmem:[%s3397_s2 + $0x310] sm:$0xff] %v1069_v41  ;;  %1311 = vst.msk [vmem:[%s3397_s2 + $0x318] sm:$0xff] %vm1212_vm0, %v1070_v42 }
  0xe5   :  { %1308 = vst [vmem:[%s3397_s2 + $0x300] sm:$0xff] %v1067_v43  ;;  %1309 = vst.msk [vmem:[%s3397_s2 + $0x308] sm:$0xff] %vm1212_vm0, %v1068_v44  ;;  %v629_v51 = vpop.permute.xlu1 %628  ;;  %v624_v52 = vpop.permute.xlu0 %623 }
  0xe6   :  { %v1073_v53 = vmul.f32 %v629_v51, %v233_v45  ;;  %v1074_v54 = vmul.f32 %v629_v51, %v234_v46  ;;  %v1071_v55 = vmul.f32 %v624_v52, %v231_v47  ;;  %v1072_v56 = vmul.f32 %v624_v52, %v232_v48  ;;  %948 = vperm.xlu1 %1458, %v126_v49   ;;  %v257_v47 = vld [vmem:[%s3396_s1 + $0x3f0] sm:$0xff]  ;;  %v258_v48 = vld [vmem:[%s3396_s1 + $0x3f8] sm:$0xff]  ;;  %v255_v49 = vld [vmem:[%s3396_s1 + $0x3e0] sm:$0xff] }
  0xe7   :  { %943 = vperm.xlu0 %1457, %v125_v50   ;;  %v256_v50 = vld [vmem:[%s3396_s1 + $0x3e8] sm:$0xff] }
  0xe8   :  { %1314 = vst [vmem:[%s3397_s2 + $0x330] sm:$0xff] %v1073_v53  ;;  %1315 = vst.msk [vmem:[%s3397_s2 + $0x338] sm:$0xff] %vm1212_vm0, %v1074_v54 }
  0xe9   :  { %1312 = vst [vmem:[%s3397_s2 + $0x320] sm:$0xff] %v1071_v55  ;;  %1313 = vst.msk [vmem:[%s3397_s2 + $0x328] sm:$0xff] %vm1212_vm0, %v1072_v56  ;;  %v639_v63 = vpop.permute.xlu1 %638  ;;  %v634_v0 = vpop.permute.xlu0 %633 }
  0xea   :  { %v1077_v1 = vmul.f32 %v639_v63, %v237_v57  ;;  %v1078_v2 = vmul.f32 %v639_v63, %v238_v58  ;;  %v1075_v3 = vmul.f32 %v634_v0, %v235_v59  ;;  %v1076_v4 = vmul.f32 %v634_v0, %v236_v60  ;;  %958 = vperm.xlu1 %1458, %v128_v61   ;;  %v261_v57 = vld [vmem:[%s3396_s1 + $0x410] sm:$0xff]  ;;  %v262_v58 = vld [vmem:[%s3396_s1 + $0x418] sm:$0xff]  ;;  %v259_v59 = vld [vmem:[%s3396_s1 + $0x400] sm:$0xff] }
  0xeb   :  { %953 = vperm.xlu0 %1457, %v127_v62   ;;  %v260_v60 = vld [vmem:[%s3396_s1 + $0x408] sm:$0xff] }
  0xec   :  { %1318 = vst [vmem:[%s3397_s2 + $0x350] sm:$0xff] %v1077_v1  ;;  %1319 = vst.msk [vmem:[%s3397_s2 + $0x358] sm:$0xff] %vm1212_vm0, %v1078_v2 }
  0xed   :  { %1316 = vst [vmem:[%s3397_s2 + $0x340] sm:$0xff] %v1075_v3  ;;  %1317 = vst.msk [vmem:[%s3397_s2 + $0x348] sm:$0xff] %vm1212_vm0, %v1076_v4  ;;  %v649_v11 = vpop.permute.xlu1 %648  ;;  %v644_v12 = vpop.permute.xlu0 %643  ;;  %v265_v3 = vld [vmem:[%s3396_s1 + $0x430] sm:$0xff]  ;;  %v266_v4 = vld [vmem:[%s3396_s1 + $0x438] sm:$0xff] }
  0xee   :  { %v1081_v13 = vmul.f32 %v649_v11, %v241_v5  ;;  %v1082_v14 = vmul.f32 %v649_v11, %v242_v6  ;;  %v1079_v15 = vmul.f32 %v644_v12, %v239_v7  ;;  %v1080_v16 = vmul.f32 %v644_v12, %v240_v8  ;;  %968 = vperm.xlu1 %1458, %v130_v9   ;;  %v263_v5 = vld [vmem:[%s3396_s1 + $0x420] sm:$0xff]  ;;  %v264_v6 = vld [vmem:[%s3396_s1 + $0x428] sm:$0xff] }
  0xef   :  { %963 = vperm.xlu0 %1457, %v129_v10  }
  0xf0   :  { %1322 = vst [vmem:[%s3397_s2 + $0x370] sm:$0xff] %v1081_v13  ;;  %1323 = vst.msk [vmem:[%s3397_s2 + $0x378] sm:$0xff] %vm1212_vm0, %v1082_v14  ;;  %v269_v13 = vld [vmem:[%s3396_s1 + $0x450] sm:$0xff]  ;;  %v270_v14 = vld [vmem:[%s3396_s1 + $0x458] sm:$0xff] }
  0xf1   :  { %1320 = vst [vmem:[%s3397_s2 + $0x360] sm:$0xff] %v1079_v15  ;;  %1321 = vst.msk [vmem:[%s3397_s2 + $0x368] sm:$0xff] %vm1212_vm0, %v1080_v16  ;;  %v659_v21 = vpop.permute.xlu1 %658  ;;  %v654_v22 = vpop.permute.xlu0 %653  ;;  %v267_v15 = vld [vmem:[%s3396_s1 + $0x440] sm:$0xff]  ;;  %v268_v16 = vld [vmem:[%s3396_s1 + $0x448] sm:$0xff] }
  0xf2   :  { %v1085_v23 = vmul.f32 %v659_v21, %v245_v17  ;;  %v1086_v24 = vmul.f32 %v659_v21, %v246_v18  ;;  %v1083_v25 = vmul.f32 %v654_v22, %v243_v19  ;;  %v1084_v26 = vmul.f32 %v654_v22, %v244_v20 }
  0xf4   :  { %1326 = vst [vmem:[%s3397_s2 + $0x390] sm:$0xff] %v1085_v23  ;;  %1327 = vst.msk [vmem:[%s3397_s2 + $0x398] sm:$0xff] %vm1212_vm0, %v1086_v24  ;;  %v273_v23 = vld [vmem:[%s3396_s1 + $0x470] sm:$0xff]  ;;  %v274_v24 = vld [vmem:[%s3396_s1 + $0x478] sm:$0xff] }
  0xf5   :  { %1324 = vst [vmem:[%s3397_s2 + $0x380] sm:$0xff] %v1083_v25  ;;  %1325 = vst.msk [vmem:[%s3397_s2 + $0x388] sm:$0xff] %vm1212_vm0, %v1084_v26  ;;  %v669_v31 = vpop.permute.xlu1 %668  ;;  %v664_v32 = vpop.permute.xlu0 %663  ;;  %v271_v25 = vld [vmem:[%s3396_s1 + $0x460] sm:$0xff]  ;;  %v272_v26 = vld [vmem:[%s3396_s1 + $0x468] sm:$0xff] }
  0xf6   :  { %v1089_v33 = vmul.f32 %v669_v31, %v249_v27  ;;  %v1090_v34 = vmul.f32 %v669_v31, %v250_v28  ;;  %v1087_v35 = vmul.f32 %v664_v32, %v247_v29  ;;  %v1088_v36 = vmul.f32 %v664_v32, %v248_v30 }
  0xf8   :  { %1330 = vst [vmem:[%s3397_s2 + $0x3b0] sm:$0xff] %v1089_v33  ;;  %1331 = vst.msk [vmem:[%s3397_s2 + $0x3b8] sm:$0xff] %vm1212_vm0, %v1090_v34  ;;  %v277_v33 = vld [vmem:[%s3396_s1 + $0x490] sm:$0xff]  ;;  %v278_v34 = vld [vmem:[%s3396_s1 + $0x498] sm:$0xff] }
  0xf9   :  { %1328 = vst [vmem:[%s3397_s2 + $0x3a0] sm:$0xff] %v1087_v35  ;;  %1329 = vst.msk [vmem:[%s3397_s2 + $0x3a8] sm:$0xff] %vm1212_vm0, %v1088_v36  ;;  %v679_v41 = vpop.permute.xlu1 %678  ;;  %v674_v42 = vpop.permute.xlu0 %673  ;;  %v275_v35 = vld [vmem:[%s3396_s1 + $0x480] sm:$0xff]  ;;  %v276_v36 = vld [vmem:[%s3396_s1 + $0x488] sm:$0xff] }
  0xfa   :  { %v1093_v43 = vmul.f32 %v679_v41, %v253_v37  ;;  %v1094_v44 = vmul.f32 %v679_v41, %v254_v38  ;;  %v1091_v45 = vmul.f32 %v674_v42, %v251_v39  ;;  %v1092_v46 = vmul.f32 %v674_v42, %v252_v40 }
  0xfc   :  { %1334 = vst [vmem:[%s3397_s2 + $0x3d0] sm:$0xff] %v1093_v43  ;;  %1335 = vst.msk [vmem:[%s3397_s2 + $0x3d8] sm:$0xff] %vm1212_vm0, %v1094_v44  ;;  %v281_v43 = vld [vmem:[%s3396_s1 + $0x4b0] sm:$0xff]  ;;  %v282_v44 = vld [vmem:[%s3396_s1 + $0x4b8] sm:$0xff] }
  0xfd   :  { %1332 = vst [vmem:[%s3397_s2 + $0x3c0] sm:$0xff] %v1091_v45  ;;  %1333 = vst.msk [vmem:[%s3397_s2 + $0x3c8] sm:$0xff] %vm1212_vm0, %v1092_v46  ;;  %v689_v51 = vpop.permute.xlu1 %688  ;;  %v684_v52 = vpop.permute.xlu0 %683  ;;  %v279_v45 = vld [vmem:[%s3396_s1 + $0x4a0] sm:$0xff]  ;;  %v280_v46 = vld [vmem:[%s3396_s1 + $0x4a8] sm:$0xff] }
  0xfe   :  { %v1097_v53 = vmul.f32 %v689_v51, %v257_v47  ;;  %v1098_v54 = vmul.f32 %v689_v51, %v258_v48  ;;  %v1095_v55 = vmul.f32 %v684_v52, %v255_v49  ;;  %v1096_v56 = vmul.f32 %v684_v52, %v256_v50 }
 0x100   :  { %1338 = vst [vmem:[%s3397_s2 + $0x3f0] sm:$0xff] %v1097_v53  ;;  %1339 = vst.msk [vmem:[%s3397_s2 + $0x3f8] sm:$0xff] %vm1212_vm0, %v1098_v54  ;;  %v285_v53 = vld [vmem:[%s3396_s1 + $0x4d0] sm:$0xff]  ;;  %v286_v54 = vld [vmem:[%s3396_s1 + $0x4d8] sm:$0xff] }
 0x101   :  { %1336 = vst [vmem:[%s3397_s2 + $0x3e0] sm:$0xff] %v1095_v55  ;;  %1337 = vst.msk [vmem:[%s3397_s2 + $0x3e8] sm:$0xff] %vm1212_vm0, %v1096_v56  ;;  %v699_v61 = vpop.permute.xlu1 %698  ;;  %v283_v55 = vld [vmem:[%s3396_s1 + $0x4c0] sm:$0xff]  ;;  %v284_v56 = vld [vmem:[%s3396_s1 + $0x4c8] sm:$0xff] }
 0x102   :  { %v1101_v62 = vmul.f32 %v699_v61, %v261_v57  ;;  %v1102_v63 = vmul.f32 %v699_v61, %v262_v58  ;;  %v694_v0 = vpop.permute.xlu0 %693 }
 0x103   :  { %v1099_v1 = vmul.f32 %v694_v0, %v259_v59  ;;  %v1100_v2 = vmul.f32 %v694_v0, %v260_v60  ;;  %v290_v0 = vld [vmem:[%s3396_s1 + $0x4f8] sm:$0xff] }
 0x104   :  { %1342 = vst [vmem:[%s3397_s2 + $0x410] sm:$0xff] %v1101_v62  ;;  %1343 = vst.msk [vmem:[%s3397_s2 + $0x418] sm:$0xff] %vm1212_vm0, %v1102_v63  ;;  %v289_v63 = vld [vmem:[%s3396_s1 + $0x4f0] sm:$0xff] }
 0x105   :  { %1340 = vst [vmem:[%s3397_s2 + $0x400] sm:$0xff] %v1099_v1  ;;  %1341 = vst.msk [vmem:[%s3397_s2 + $0x408] sm:$0xff] %vm1212_vm0, %v1100_v2  ;;  %v709_v7 = vpop.permute.xlu1 %708  ;;  %v287_v1 = vld [vmem:[%s3396_s1 + $0x4e0] sm:$0xff]  ;;  %v288_v2 = vld [vmem:[%s3396_s1 + $0x4e8] sm:$0xff] }
 0x106   :  { %v1105_v8 = vmul.f32 %v709_v7, %v265_v3  ;;  %v1106_v9 = vmul.f32 %v709_v7, %v266_v4  ;;  %v704_v10 = vpop.permute.xlu0 %703 }
 0x107   :  { %v1103_v11 = vmul.f32 %v704_v10, %v263_v5  ;;  %v1104_v12 = vmul.f32 %v704_v10, %v264_v6  ;;  %v294_v10 = vld [vmem:[%s3396_s1 + $0x518] sm:$0xff] }
 0x108   :  { %1346 = vst [vmem:[%s3397_s2 + $0x430] sm:$0xff] %v1105_v8  ;;  %1347 = vst.msk [vmem:[%s3397_s2 + $0x438] sm:$0xff] %vm1212_vm0, %v1106_v9  ;;  %v293_v9 = vld [vmem:[%s3396_s1 + $0x510] sm:$0xff] }
 0x109   :  { %1344 = vst [vmem:[%s3397_s2 + $0x420] sm:$0xff] %v1103_v11  ;;  %1345 = vst.msk [vmem:[%s3397_s2 + $0x428] sm:$0xff] %vm1212_vm0, %v1104_v12  ;;  %v719_v17 = vpop.permute.xlu1 %718  ;;  %v291_v11 = vld [vmem:[%s3396_s1 + $0x500] sm:$0xff]  ;;  %v292_v12 = vld [vmem:[%s3396_s1 + $0x508] sm:$0xff] }
 0x10a   :  { %v1109_v18 = vmul.f32 %v719_v17, %v269_v13  ;;  %v1110_v19 = vmul.f32 %v719_v17, %v270_v14  ;;  %v714_v20 = vpop.permute.xlu0 %713 }
 0x10b   :  { %v1107_v21 = vmul.f32 %v714_v20, %v267_v15  ;;  %v1108_v22 = vmul.f32 %v714_v20, %v268_v16  ;;  %v298_v20 = vld [vmem:[%s3396_s1 + $0x538] sm:$0xff] }
 0x10c   :  { %1350 = vst [vmem:[%s3397_s2 + $0x450] sm:$0xff] %v1109_v18  ;;  %1351 = vst.msk [vmem:[%s3397_s2 + $0x458] sm:$0xff] %vm1212_vm0, %v1110_v19  ;;  %v297_v19 = vld [vmem:[%s3396_s1 + $0x530] sm:$0xff] }
 0x10d   :  { %1348 = vst [vmem:[%s3397_s2 + $0x440] sm:$0xff] %v1107_v21  ;;  %1349 = vst.msk [vmem:[%s3397_s2 + $0x448] sm:$0xff] %vm1212_vm0, %v1108_v22  ;;  %v729_v27 = vpop.permute.xlu1 %728  ;;  %v295_v21 = vld [vmem:[%s3396_s1 + $0x520] sm:$0xff]  ;;  %v296_v22 = vld [vmem:[%s3396_s1 + $0x528] sm:$0xff] }
 0x10e   :  { %v1113_v28 = vmul.f32 %v729_v27, %v273_v23  ;;  %v1114_v29 = vmul.f32 %v729_v27, %v274_v24  ;;  %v724_v30 = vpop.permute.xlu0 %723 }
 0x10f   :  { %v1111_v31 = vmul.f32 %v724_v30, %v271_v25  ;;  %v1112_v32 = vmul.f32 %v724_v30, %v272_v26  ;;  %v302_v30 = vld [vmem:[%s3396_s1 + $0x558] sm:$0xff] }
 0x110   :  { %1354 = vst [vmem:[%s3397_s2 + $0x470] sm:$0xff] %v1113_v28  ;;  %1355 = vst.msk [vmem:[%s3397_s2 + $0x478] sm:$0xff] %vm1212_vm0, %v1114_v29  ;;  %v301_v29 = vld [vmem:[%s3396_s1 + $0x550] sm:$0xff] }
 0x111   :  { %1352 = vst [vmem:[%s3397_s2 + $0x460] sm:$0xff] %v1111_v31  ;;  %1353 = vst.msk [vmem:[%s3397_s2 + $0x468] sm:$0xff] %vm1212_vm0, %v1112_v32  ;;  %v739_v37 = vpop.permute.xlu1 %738  ;;  %v299_v31 = vld [vmem:[%s3396_s1 + $0x540] sm:$0xff]  ;;  %v300_v32 = vld [vmem:[%s3396_s1 + $0x548] sm:$0xff] }
 0x112   :  { %v1117_v38 = vmul.f32 %v739_v37, %v277_v33  ;;  %v1118_v39 = vmul.f32 %v739_v37, %v278_v34  ;;  %v734_v40 = vpop.permute.xlu0 %733 }
 0x113   :  { %v1115_v41 = vmul.f32 %v734_v40, %v275_v35  ;;  %v1116_v42 = vmul.f32 %v734_v40, %v276_v36  ;;  %v306_v40 = vld [vmem:[%s3396_s1 + $0x578] sm:$0xff] }
 0x114   :  { %1358 = vst [vmem:[%s3397_s2 + $0x490] sm:$0xff] %v1117_v38  ;;  %1359 = vst.msk [vmem:[%s3397_s2 + $0x498] sm:$0xff] %vm1212_vm0, %v1118_v39  ;;  %v305_v39 = vld [vmem:[%s3396_s1 + $0x570] sm:$0xff] }
 0x115   :  { %1356 = vst [vmem:[%s3397_s2 + $0x480] sm:$0xff] %v1115_v41  ;;  %1357 = vst.msk [vmem:[%s3397_s2 + $0x488] sm:$0xff] %vm1212_vm0, %v1116_v42  ;;  %v749_v47 = vpop.permute.xlu1 %748  ;;  %v303_v41 = vld [vmem:[%s3396_s1 + $0x560] sm:$0xff]  ;;  %v304_v42 = vld [vmem:[%s3396_s1 + $0x568] sm:$0xff] }
 0x116   :  { %v1121_v48 = vmul.f32 %v749_v47, %v281_v43  ;;  %v1122_v49 = vmul.f32 %v749_v47, %v282_v44  ;;  %v744_v50 = vpop.permute.xlu0 %743 }
 0x117   :  { %v1119_v51 = vmul.f32 %v744_v50, %v279_v45  ;;  %v1120_v52 = vmul.f32 %v744_v50, %v280_v46  ;;  %v310_v50 = vld [vmem:[%s3396_s1 + $0x598] sm:$0xff] }
 0x118   :  { %1362 = vst [vmem:[%s3397_s2 + $0x4b0] sm:$0xff] %v1121_v48  ;;  %1363 = vst.msk [vmem:[%s3397_s2 + $0x4b8] sm:$0xff] %vm1212_vm0, %v1122_v49  ;;  %v309_v49 = vld [vmem:[%s3396_s1 + $0x590] sm:$0xff] }
 0x119   :  { %1360 = vst [vmem:[%s3397_s2 + $0x4a0] sm:$0xff] %v1119_v51  ;;  %1361 = vst.msk [vmem:[%s3397_s2 + $0x4a8] sm:$0xff] %vm1212_vm0, %v1120_v52  ;;  %v759_v57 = vpop.permute.xlu1 %758  ;;  %v307_v51 = vld [vmem:[%s3396_s1 + $0x580] sm:$0xff]  ;;  %v308_v52 = vld [vmem:[%s3396_s1 + $0x588] sm:$0xff] }
 0x11a   :  { %v1125_v58 = vmul.f32 %v759_v57, %v285_v53  ;;  %v1126_v59 = vmul.f32 %v759_v57, %v286_v54  ;;  %v754_v60 = vpop.permute.xlu0 %753 }
 0x11b   :  { %v1123_v61 = vmul.f32 %v754_v60, %v283_v55  ;;  %v1124_v62 = vmul.f32 %v754_v60, %v284_v56  ;;  %v314_v60 = vld [vmem:[%s3396_s1 + $0x5b8] sm:$0xff] }
 0x11c   :  { %1366 = vst [vmem:[%s3397_s2 + $0x4d0] sm:$0xff] %v1125_v58  ;;  %1367 = vst.msk [vmem:[%s3397_s2 + $0x4d8] sm:$0xff] %vm1212_vm0, %v1126_v59  ;;  %v313_v59 = vld [vmem:[%s3396_s1 + $0x5b0] sm:$0xff] }
 0x11d   :  { %1364 = vst [vmem:[%s3397_s2 + $0x4c0] sm:$0xff] %v1123_v61  ;;  %1365 = vst.msk [vmem:[%s3397_s2 + $0x4c8] sm:$0xff] %vm1212_vm0, %v1124_v62  ;;  %v769_v3 = vpop.permute.xlu1 %768  ;;  %v311_v61 = vld [vmem:[%s3396_s1 + $0x5a0] sm:$0xff]  ;;  %v312_v62 = vld [vmem:[%s3396_s1 + $0x5a8] sm:$0xff] }
 0x11e   :  { %v1129_v4 = vmul.f32 %v769_v3, %v289_v63  ;;  %v1130_v5 = vmul.f32 %v769_v3, %v290_v0  ;;  %v764_v6 = vpop.permute.xlu0 %763 }
 0x11f   :  { %v1127_v7 = vmul.f32 %v764_v6, %v287_v1  ;;  %v1128_v8 = vmul.f32 %v764_v6, %v288_v2  ;;  %v318_v6 = vld [vmem:[%s3396_s1 + $0x5d8] sm:$0xff] }
 0x120   :  { %1370 = vst [vmem:[%s3397_s2 + $0x4f0] sm:$0xff] %v1129_v4  ;;  %1371 = vst.msk [vmem:[%s3397_s2 + $0x4f8] sm:$0xff] %vm1212_vm0, %v1130_v5  ;;  %v317_v5 = vld [vmem:[%s3396_s1 + $0x5d0] sm:$0xff] }
 0x121   :  { %1368 = vst [vmem:[%s3397_s2 + $0x4e0] sm:$0xff] %v1127_v7  ;;  %1369 = vst.msk [vmem:[%s3397_s2 + $0x4e8] sm:$0xff] %vm1212_vm0, %v1128_v8  ;;  %v779_v13 = vpop.permute.xlu1 %778  ;;  %v315_v7 = vld [vmem:[%s3396_s1 + $0x5c0] sm:$0xff]  ;;  %v316_v8 = vld [vmem:[%s3396_s1 + $0x5c8] sm:$0xff] }
 0x122   :  { %v1133_v14 = vmul.f32 %v779_v13, %v293_v9  ;;  %v1134_v15 = vmul.f32 %v779_v13, %v294_v10  ;;  %v774_v16 = vpop.permute.xlu0 %773 }
 0x123   :  { %v1131_v17 = vmul.f32 %v774_v16, %v291_v11  ;;  %v1132_v18 = vmul.f32 %v774_v16, %v292_v12  ;;  %v322_v16 = vld [vmem:[%s3396_s1 + $0x5f8] sm:$0xff] }
 0x124   :  { %1374 = vst [vmem:[%s3397_s2 + $0x510] sm:$0xff] %v1133_v14  ;;  %1375 = vst.msk [vmem:[%s3397_s2 + $0x518] sm:$0xff] %vm1212_vm0, %v1134_v15  ;;  %v321_v15 = vld [vmem:[%s3396_s1 + $0x5f0] sm:$0xff] }
 0x125   :  { %1372 = vst [vmem:[%s3397_s2 + $0x500] sm:$0xff] %v1131_v17  ;;  %1373 = vst.msk [vmem:[%s3397_s2 + $0x508] sm:$0xff] %vm1212_vm0, %v1132_v18  ;;  %v789_v23 = vpop.permute.xlu1 %788  ;;  %v319_v17 = vld [vmem:[%s3396_s1 + $0x5e0] sm:$0xff]  ;;  %v320_v18 = vld [vmem:[%s3396_s1 + $0x5e8] sm:$0xff] }
 0x126   :  { %v1137_v24 = vmul.f32 %v789_v23, %v297_v19  ;;  %v1138_v25 = vmul.f32 %v789_v23, %v298_v20  ;;  %v784_v26 = vpop.permute.xlu0 %783 }
 0x127   :  { %v1135_v27 = vmul.f32 %v784_v26, %v295_v21  ;;  %v1136_v28 = vmul.f32 %v784_v26, %v296_v22  ;;  %v326_v26 = vld [vmem:[%s3396_s1 + $0x618] sm:$0xff] }
 0x128   :  { %1378 = vst [vmem:[%s3397_s2 + $0x530] sm:$0xff] %v1137_v24  ;;  %1379 = vst.msk [vmem:[%s3397_s2 + $0x538] sm:$0xff] %vm1212_vm0, %v1138_v25  ;;  %v325_v25 = vld [vmem:[%s3396_s1 + $0x610] sm:$0xff] }
 0x129   :  { %1376 = vst [vmem:[%s3397_s2 + $0x520] sm:$0xff] %v1135_v27  ;;  %1377 = vst.msk [vmem:[%s3397_s2 + $0x528] sm:$0xff] %vm1212_vm0, %v1136_v28  ;;  %v799_v33 = vpop.permute.xlu1 %798  ;;  %v323_v27 = vld [vmem:[%s3396_s1 + $0x600] sm:$0xff]  ;;  %v324_v28 = vld [vmem:[%s3396_s1 + $0x608] sm:$0xff] }
 0x12a   :  { %v1141_v34 = vmul.f32 %v799_v33, %v301_v29  ;;  %v1142_v35 = vmul.f32 %v799_v33, %v302_v30  ;;  %v794_v36 = vpop.permute.xlu0 %793 }
 0x12b   :  { %v1139_v37 = vmul.f32 %v794_v36, %v299_v31  ;;  %v1140_v38 = vmul.f32 %v794_v36, %v300_v32  ;;  %v330_v36 = vld [vmem:[%s3396_s1 + $0x638] sm:$0xff] }
 0x12c   :  { %1382 = vst [vmem:[%s3397_s2 + $0x550] sm:$0xff] %v1141_v34  ;;  %1383 = vst.msk [vmem:[%s3397_s2 + $0x558] sm:$0xff] %vm1212_vm0, %v1142_v35  ;;  %v329_v35 = vld [vmem:[%s3396_s1 + $0x630] sm:$0xff] }
 0x12d   :  { %1380 = vst [vmem:[%s3397_s2 + $0x540] sm:$0xff] %v1139_v37  ;;  %1381 = vst.msk [vmem:[%s3397_s2 + $0x548] sm:$0xff] %vm1212_vm0, %v1140_v38  ;;  %v809_v43 = vpop.permute.xlu1 %808  ;;  %v327_v37 = vld [vmem:[%s3396_s1 + $0x620] sm:$0xff]  ;;  %v328_v38 = vld [vmem:[%s3396_s1 + $0x628] sm:$0xff] }
 0x12e   :  { %v1145_v44 = vmul.f32 %v809_v43, %v305_v39  ;;  %v1146_v45 = vmul.f32 %v809_v43, %v306_v40  ;;  %v804_v46 = vpop.permute.xlu0 %803 }
 0x12f   :  { %v1143_v47 = vmul.f32 %v804_v46, %v303_v41  ;;  %v1144_v48 = vmul.f32 %v804_v46, %v304_v42  ;;  %v334_v46 = vld [vmem:[%s3396_s1 + $0x658] sm:$0xff] }
 0x130   :  { %1386 = vst [vmem:[%s3397_s2 + $0x570] sm:$0xff] %v1145_v44  ;;  %1387 = vst.msk [vmem:[%s3397_s2 + $0x578] sm:$0xff] %vm1212_vm0, %v1146_v45  ;;  %v333_v45 = vld [vmem:[%s3396_s1 + $0x650] sm:$0xff] }
 0x131   :  { %1384 = vst [vmem:[%s3397_s2 + $0x560] sm:$0xff] %v1143_v47  ;;  %1385 = vst.msk [vmem:[%s3397_s2 + $0x568] sm:$0xff] %vm1212_vm0, %v1144_v48  ;;  %v819_v53 = vpop.permute.xlu1 %818  ;;  %v331_v47 = vld [vmem:[%s3396_s1 + $0x640] sm:$0xff]  ;;  %v332_v48 = vld [vmem:[%s3396_s1 + $0x648] sm:$0xff] }
 0x132   :  { %v1149_v54 = vmul.f32 %v819_v53, %v309_v49  ;;  %v1150_v55 = vmul.f32 %v819_v53, %v310_v50  ;;  %v814_v56 = vpop.permute.xlu0 %813 }
 0x133   :  { %v1147_v57 = vmul.f32 %v814_v56, %v307_v51  ;;  %v1148_v58 = vmul.f32 %v814_v56, %v308_v52  ;;  %v338_v56 = vld [vmem:[%s3396_s1 + $0x678] sm:$0xff] }
 0x134   :  { %1390 = vst [vmem:[%s3397_s2 + $0x590] sm:$0xff] %v1149_v54  ;;  %1391 = vst.msk [vmem:[%s3397_s2 + $0x598] sm:$0xff] %vm1212_vm0, %v1150_v55  ;;  %v337_v55 = vld [vmem:[%s3396_s1 + $0x670] sm:$0xff] }
 0x135   :  { %1388 = vst [vmem:[%s3397_s2 + $0x580] sm:$0xff] %v1147_v57  ;;  %1389 = vst.msk [vmem:[%s3397_s2 + $0x588] sm:$0xff] %vm1212_vm0, %v1148_v58  ;;  %v829_v63 = vpop.permute.xlu1 %828  ;;  %v335_v57 = vld [vmem:[%s3396_s1 + $0x660] sm:$0xff]  ;;  %v336_v58 = vld [vmem:[%s3396_s1 + $0x668] sm:$0xff] }
 0x136   :  { %v1153_v0 = vmul.f32 %v829_v63, %v313_v59  ;;  %v1154_v1 = vmul.f32 %v829_v63, %v314_v60  ;;  %v824_v2 = vpop.permute.xlu0 %823 }
 0x137   :  { %v1151_v3 = vmul.f32 %v824_v2, %v311_v61  ;;  %v1152_v4 = vmul.f32 %v824_v2, %v312_v62  ;;  %v342_v2 = vld [vmem:[%s3396_s1 + $0x698] sm:$0xff] }
 0x138   :  { %1394 = vst [vmem:[%s3397_s2 + $0x5b0] sm:$0xff] %v1153_v0  ;;  %1395 = vst.msk [vmem:[%s3397_s2 + $0x5b8] sm:$0xff] %vm1212_vm0, %v1154_v1  ;;  %v341_v1 = vld [vmem:[%s3396_s1 + $0x690] sm:$0xff] }
 0x139   :  { %1392 = vst [vmem:[%s3397_s2 + $0x5a0] sm:$0xff] %v1151_v3  ;;  %1393 = vst.msk [vmem:[%s3397_s2 + $0x5a8] sm:$0xff] %vm1212_vm0, %v1152_v4  ;;  %v839_v9 = vpop.permute.xlu1 %838  ;;  %v339_v3 = vld [vmem:[%s3396_s1 + $0x680] sm:$0xff]  ;;  %v340_v4 = vld [vmem:[%s3396_s1 + $0x688] sm:$0xff] }
 0x13a   :  { %v1157_v10 = vmul.f32 %v839_v9, %v317_v5  ;;  %v1158_v11 = vmul.f32 %v839_v9, %v318_v6  ;;  %v834_v12 = vpop.permute.xlu0 %833 }
 0x13b   :  { %v1155_v13 = vmul.f32 %v834_v12, %v315_v7  ;;  %v1156_v14 = vmul.f32 %v834_v12, %v316_v8  ;;  %v346_v12 = vld [vmem:[%s3396_s1 + $0x6b8] sm:$0xff] }
 0x13c   :  { %1398 = vst [vmem:[%s3397_s2 + $0x5d0] sm:$0xff] %v1157_v10  ;;  %1399 = vst.msk [vmem:[%s3397_s2 + $0x5d8] sm:$0xff] %vm1212_vm0, %v1158_v11  ;;  %v345_v11 = vld [vmem:[%s3396_s1 + $0x6b0] sm:$0xff] }
 0x13d   :  { %1396 = vst [vmem:[%s3397_s2 + $0x5c0] sm:$0xff] %v1155_v13  ;;  %1397 = vst.msk [vmem:[%s3397_s2 + $0x5c8] sm:$0xff] %vm1212_vm0, %v1156_v14  ;;  %v849_v19 = vpop.permute.xlu1 %848  ;;  %v343_v13 = vld [vmem:[%s3396_s1 + $0x6a0] sm:$0xff]  ;;  %v344_v14 = vld [vmem:[%s3396_s1 + $0x6a8] sm:$0xff] }
 0x13e   :  { %v1161_v20 = vmul.f32 %v849_v19, %v321_v15  ;;  %v1162_v21 = vmul.f32 %v849_v19, %v322_v16  ;;  %v844_v22 = vpop.permute.xlu0 %843 }
 0x13f   :  { %v1159_v23 = vmul.f32 %v844_v22, %v319_v17  ;;  %v1160_v24 = vmul.f32 %v844_v22, %v320_v18  ;;  %v350_v22 = vld [vmem:[%s3396_s1 + $0x6d8] sm:$0xff] }
 0x140   :  { %1402 = vst [vmem:[%s3397_s2 + $0x5f0] sm:$0xff] %v1161_v20  ;;  %1403 = vst.msk [vmem:[%s3397_s2 + $0x5f8] sm:$0xff] %vm1212_vm0, %v1162_v21  ;;  %v349_v21 = vld [vmem:[%s3396_s1 + $0x6d0] sm:$0xff] }
 0x141   :  { %1400 = vst [vmem:[%s3397_s2 + $0x5e0] sm:$0xff] %v1159_v23  ;;  %1401 = vst.msk [vmem:[%s3397_s2 + $0x5e8] sm:$0xff] %vm1212_vm0, %v1160_v24  ;;  %v859_v29 = vpop.permute.xlu1 %858  ;;  %v347_v23 = vld [vmem:[%s3396_s1 + $0x6c0] sm:$0xff]  ;;  %v348_v24 = vld [vmem:[%s3396_s1 + $0x6c8] sm:$0xff] }
 0x142   :  { %v1165_v30 = vmul.f32 %v859_v29, %v325_v25  ;;  %v1166_v31 = vmul.f32 %v859_v29, %v326_v26  ;;  %v854_v32 = vpop.permute.xlu0 %853 }
 0x143   :  { %v1163_v33 = vmul.f32 %v854_v32, %v323_v27  ;;  %v1164_v34 = vmul.f32 %v854_v32, %v324_v28  ;;  %v354_v32 = vld [vmem:[%s3396_s1 + $0x6f8] sm:$0xff] }
 0x144   :  { %1406 = vst [vmem:[%s3397_s2 + $0x610] sm:$0xff] %v1165_v30  ;;  %1407 = vst.msk [vmem:[%s3397_s2 + $0x618] sm:$0xff] %vm1212_vm0, %v1166_v31  ;;  %v353_v31 = vld [vmem:[%s3396_s1 + $0x6f0] sm:$0xff] }
 0x145   :  { %1404 = vst [vmem:[%s3397_s2 + $0x600] sm:$0xff] %v1163_v33  ;;  %1405 = vst.msk [vmem:[%s3397_s2 + $0x608] sm:$0xff] %vm1212_vm0, %v1164_v34  ;;  %v869_v39 = vpop.permute.xlu1 %868  ;;  %v351_v33 = vld [vmem:[%s3396_s1 + $0x6e0] sm:$0xff]  ;;  %v352_v34 = vld [vmem:[%s3396_s1 + $0x6e8] sm:$0xff] }
 0x146   :  { %v1169_v40 = vmul.f32 %v869_v39, %v329_v35  ;;  %v1170_v41 = vmul.f32 %v869_v39, %v330_v36  ;;  %v864_v42 = vpop.permute.xlu0 %863 }
 0x147   :  { %v1167_v43 = vmul.f32 %v864_v42, %v327_v37  ;;  %v1168_v44 = vmul.f32 %v864_v42, %v328_v38  ;;  %v358_v42 = vld [vmem:[%s3396_s1 + $0x718] sm:$0xff] }
 0x148   :  { %1410 = vst [vmem:[%s3397_s2 + $0x630] sm:$0xff] %v1169_v40  ;;  %1411 = vst.msk [vmem:[%s3397_s2 + $0x638] sm:$0xff] %vm1212_vm0, %v1170_v41  ;;  %v357_v41 = vld [vmem:[%s3396_s1 + $0x710] sm:$0xff] }
 0x149   :  { %1408 = vst [vmem:[%s3397_s2 + $0x620] sm:$0xff] %v1167_v43  ;;  %1409 = vst.msk [vmem:[%s3397_s2 + $0x628] sm:$0xff] %vm1212_vm0, %v1168_v44  ;;  %v879_v49 = vpop.permute.xlu1 %878  ;;  %v355_v43 = vld [vmem:[%s3396_s1 + $0x700] sm:$0xff]  ;;  %v356_v44 = vld [vmem:[%s3396_s1 + $0x708] sm:$0xff] }
 0x14a   :  { %v1173_v50 = vmul.f32 %v879_v49, %v333_v45  ;;  %v1174_v51 = vmul.f32 %v879_v49, %v334_v46  ;;  %v874_v52 = vpop.permute.xlu0 %873 }
 0x14b   :  { %v1171_v53 = vmul.f32 %v874_v52, %v331_v47  ;;  %v1172_v54 = vmul.f32 %v874_v52, %v332_v48  ;;  %v362_v52 = vld [vmem:[%s3396_s1 + $0x738] sm:$0xff] }
 0x14c   :  { %1414 = vst [vmem:[%s3397_s2 + $0x650] sm:$0xff] %v1173_v50  ;;  %1415 = vst.msk [vmem:[%s3397_s2 + $0x658] sm:$0xff] %vm1212_vm0, %v1174_v51  ;;  %v361_v51 = vld [vmem:[%s3396_s1 + $0x730] sm:$0xff] }
 0x14d   :  { %1412 = vst [vmem:[%s3397_s2 + $0x640] sm:$0xff] %v1171_v53  ;;  %1413 = vst.msk [vmem:[%s3397_s2 + $0x648] sm:$0xff] %vm1212_vm0, %v1172_v54  ;;  %v889_v59 = vpop.permute.xlu1 %888  ;;  %v359_v53 = vld [vmem:[%s3396_s1 + $0x720] sm:$0xff]  ;;  %v360_v54 = vld [vmem:[%s3396_s1 + $0x728] sm:$0xff] }
 0x14e   :  { %v1177_v60 = vmul.f32 %v889_v59, %v337_v55  ;;  %v1178_v61 = vmul.f32 %v889_v59, %v338_v56  ;;  %v884_v62 = vpop.permute.xlu0 %883 }
 0x14f   :  { %v1175_v63 = vmul.f32 %v884_v62, %v335_v57  ;;  %v1176_v0 = vmul.f32 %v884_v62, %v336_v58  ;;  %v366_v62 = vld [vmem:[%s3396_s1 + $0x758] sm:$0xff] }
 0x150   :  { %1418 = vst [vmem:[%s3397_s2 + $0x670] sm:$0xff] %v1177_v60  ;;  %1419 = vst.msk [vmem:[%s3397_s2 + $0x678] sm:$0xff] %vm1212_vm0, %v1178_v61  ;;  %v365_v61 = vld [vmem:[%s3396_s1 + $0x750] sm:$0xff] }
 0x151   :  { %1416 = vst [vmem:[%s3397_s2 + $0x660] sm:$0xff] %v1175_v63  ;;  %1417 = vst.msk [vmem:[%s3397_s2 + $0x668] sm:$0xff] %vm1212_vm0, %v1176_v0  ;;  %v899_v5 = vpop.permute.xlu1 %898  ;;  %v363_v63 = vld [vmem:[%s3396_s1 + $0x740] sm:$0xff]  ;;  %v364_v0 = vld [vmem:[%s3396_s1 + $0x748] sm:$0xff] }
 0x152   :  { %v1181_v6 = vmul.f32 %v899_v5, %v341_v1  ;;  %v1182_v7 = vmul.f32 %v899_v5, %v342_v2  ;;  %v894_v8 = vpop.permute.xlu0 %893 }
 0x153   :  { %v1179_v9 = vmul.f32 %v894_v8, %v339_v3  ;;  %v1180_v10 = vmul.f32 %v894_v8, %v340_v4  ;;  %v370_v8 = vld [vmem:[%s3396_s1 + $0x778] sm:$0xff] }
 0x154   :  { %1422 = vst [vmem:[%s3397_s2 + $0x690] sm:$0xff] %v1181_v6  ;;  %1423 = vst.msk [vmem:[%s3397_s2 + $0x698] sm:$0xff] %vm1212_vm0, %v1182_v7  ;;  %v369_v7 = vld [vmem:[%s3396_s1 + $0x770] sm:$0xff] }
 0x155   :  { %1420 = vst [vmem:[%s3397_s2 + $0x680] sm:$0xff] %v1179_v9  ;;  %1421 = vst.msk [vmem:[%s3397_s2 + $0x688] sm:$0xff] %vm1212_vm0, %v1180_v10  ;;  %v909_v15 = vpop.permute.xlu1 %908  ;;  %v367_v9 = vld [vmem:[%s3396_s1 + $0x760] sm:$0xff]  ;;  %v368_v10 = vld [vmem:[%s3396_s1 + $0x768] sm:$0xff] }
 0x156   :  { %v1185_v16 = vmul.f32 %v909_v15, %v345_v11  ;;  %v1186_v17 = vmul.f32 %v909_v15, %v346_v12  ;;  %v904_v18 = vpop.permute.xlu0 %903 }
 0x157   :  { %v1183_v19 = vmul.f32 %v904_v18, %v343_v13  ;;  %v1184_v20 = vmul.f32 %v904_v18, %v344_v14 }
 0x158   :  { %1426 = vst [vmem:[%s3397_s2 + $0x6b0] sm:$0xff] %v1185_v16  ;;  %1427 = vst.msk [vmem:[%s3397_s2 + $0x6b8] sm:$0xff] %vm1212_vm0, %v1186_v17 }
 0x159   :  { %1424 = vst [vmem:[%s3397_s2 + $0x6a0] sm:$0xff] %v1183_v19  ;;  %1425 = vst.msk [vmem:[%s3397_s2 + $0x6a8] sm:$0xff] %vm1212_vm0, %v1184_v20  ;;  %v919_v25 = vpop.permute.xlu1 %918 }
 0x15a   :  { %v1189_v26 = vmul.f32 %v919_v25, %v349_v21  ;;  %v1190_v27 = vmul.f32 %v919_v25, %v350_v22  ;;  %v914_v28 = vpop.permute.xlu0 %913 }
 0x15b   :  { %v1187_v29 = vmul.f32 %v914_v28, %v347_v23  ;;  %v1188_v30 = vmul.f32 %v914_v28, %v348_v24 }
 0x15c   :  { %1430 = vst [vmem:[%s3397_s2 + $0x6d0] sm:$0xff] %v1189_v26  ;;  %1431 = vst.msk [vmem:[%s3397_s2 + $0x6d8] sm:$0xff] %vm1212_vm0, %v1190_v27 }
 0x15d   :  { %1428 = vst [vmem:[%s3397_s2 + $0x6c0] sm:$0xff] %v1187_v29  ;;  %1429 = vst.msk [vmem:[%s3397_s2 + $0x6c8] sm:$0xff] %vm1212_vm0, %v1188_v30  ;;  %v929_v35 = vpop.permute.xlu1 %928 }
 0x15e   :  { %v1193_v36 = vmul.f32 %v929_v35, %v353_v31  ;;  %v1194_v37 = vmul.f32 %v929_v35, %v354_v32  ;;  %v924_v38 = vpop.permute.xlu0 %923 }
 0x15f   :  { %v1191_v39 = vmul.f32 %v924_v38, %v351_v33  ;;  %v1192_v40 = vmul.f32 %v924_v38, %v352_v34 }
 0x160   :  { %1434 = vst [vmem:[%s3397_s2 + $0x6f0] sm:$0xff] %v1193_v36  ;;  %1435 = vst.msk [vmem:[%s3397_s2 + $0x6f8] sm:$0xff] %vm1212_vm0, %v1194_v37 }
 0x161   :  { %1432 = vst [vmem:[%s3397_s2 + $0x6e0] sm:$0xff] %v1191_v39  ;;  %1433 = vst.msk [vmem:[%s3397_s2 + $0x6e8] sm:$0xff] %vm1212_vm0, %v1192_v40  ;;  %v939_v45 = vpop.permute.xlu1 %938 }
 0x162   :  { %v1197_v46 = vmul.f32 %v939_v45, %v357_v41  ;;  %v1198_v47 = vmul.f32 %v939_v45, %v358_v42  ;;  %v934_v48 = vpop.permute.xlu0 %933 }
 0x163   :  { %v1195_v49 = vmul.f32 %v934_v48, %v355_v43  ;;  %v1196_v50 = vmul.f32 %v934_v48, %v356_v44 }
 0x164   :  { %1438 = vst [vmem:[%s3397_s2 + $0x710] sm:$0xff] %v1197_v46  ;;  %1439 = vst.msk [vmem:[%s3397_s2 + $0x718] sm:$0xff] %vm1212_vm0, %v1198_v47 }
 0x165   :  { %1436 = vst [vmem:[%s3397_s2 + $0x700] sm:$0xff] %v1195_v49  ;;  %1437 = vst.msk [vmem:[%s3397_s2 + $0x708] sm:$0xff] %vm1212_vm0, %v1196_v50  ;;  %v949_v55 = vpop.permute.xlu1 %948 }
 0x166   :  { %v1201_v56 = vmul.f32 %v949_v55, %v361_v51  ;;  %v1202_v57 = vmul.f32 %v949_v55, %v362_v52  ;;  %v944_v58 = vpop.permute.xlu0 %943 }
 0x167   :  { %v1199_v59 = vmul.f32 %v944_v58, %v359_v53  ;;  %v1200_v60 = vmul.f32 %v944_v58, %v360_v54 }
 0x168   :  { %1442 = vst [vmem:[%s3397_s2 + $0x730] sm:$0xff] %v1201_v56  ;;  %1443 = vst.msk [vmem:[%s3397_s2 + $0x738] sm:$0xff] %vm1212_vm0, %v1202_v57 }
 0x169   :  { %1440 = vst [vmem:[%s3397_s2 + $0x720] sm:$0xff] %v1199_v59  ;;  %1441 = vst.msk [vmem:[%s3397_s2 + $0x728] sm:$0xff] %vm1212_vm0, %v1200_v60  ;;  %v959_v1 = vpop.permute.xlu1 %958 }
 0x16a   :  { %v1205_v2 = vmul.f32 %v959_v1, %v365_v61  ;;  %v1206_v3 = vmul.f32 %v959_v1, %v366_v62  ;;  %v954_v4 = vpop.permute.xlu0 %953 }
 0x16b   :  { %v1203_v5 = vmul.f32 %v954_v4, %v363_v63  ;;  %v1204_v6 = vmul.f32 %v954_v4, %v364_v0 }
 0x16c   :  { %1446 = vst [vmem:[%s3397_s2 + $0x750] sm:$0xff] %v1205_v2  ;;  %1447 = vst.msk [vmem:[%s3397_s2 + $0x758] sm:$0xff] %vm1212_vm0, %v1206_v3 }
 0x16d   :  { %1444 = vst [vmem:[%s3397_s2 + $0x740] sm:$0xff] %v1203_v5  ;;  %1445 = vst.msk [vmem:[%s3397_s2 + $0x748] sm:$0xff] %vm1212_vm0, %v1204_v6  ;;  %v969_v11 = vpop.permute.xlu1 %968 }
 0x16e   :  { %v1209_v12 = vmul.f32 %v969_v11, %v369_v7  ;;  %v1210_v13 = vmul.f32 %v969_v11, %v370_v8  ;;  %v964_v14 = vpop.permute.xlu0 %963 }
 0x16f   :  { %v1207_v15 = vmul.f32 %v964_v14, %v367_v9  ;;  %v1208_v16 = vmul.f32 %v964_v14, %v368_v10 }
 0x170   :  { %1450 = vst [vmem:[%s3397_s2 + $0x770] sm:$0xff] %v1209_v12  ;;  %1451 = vst.msk [vmem:[%s3397_s2 + $0x778] sm:$0xff] %vm1212_vm0, %v1210_v13 }
 0x171   :  { %1448 = vst [vmem:[%s3397_s2 + $0x760] sm:$0xff] %v1207_v15  ;;  %1449 = vst.msk [vmem:[%s3397_s2 + $0x768] sm:$0xff] %vm1212_vm0, %v1208_v16 }

</bundles_post_ra>
